<compile_context>
chip_gen: v7x
topology: tpu7x:2x2x1
jax: 0.10.0
libtpu: 0.0.40
codegen_flags: <defaults>
</compile_context>

<pallas_src>
import math

import jax
import jax.numpy as jnp
from jax import lax
from jax.experimental import pallas as pl
from jax.experimental.pallas import tpu as pltpu


def _layer_norm(h, gamma, beta, eps):
    mean = jnp.mean(h, axis=-1, keepdims=True)
    var = jnp.mean((h - mean) ** 2, axis=-1, keepdims=True)
    return (h - mean) * lax.rsqrt(var + eps) * gamma + beta


def _make_encoder_kernel(n_heads, d_qkv, seq_len, ln_eps):
    hd = n_heads * d_qkv
    scale = 1.0 / math.sqrt(d_qkv)

    def kernel(x_ref,
               ln1g_ref, ln1b_ref, wqkv_ref, bqkv_ref, wo_ref, bo_ref,
               ln2g_ref, ln2b_ref, w1_ref, bm1_ref, w2_ref, bm2_ref,
               o_ref, act_ref):
        l = pl.program_id(1)
        n_l = pl.num_programs(1)

        # Load this batch element's activations into the VMEM carry at layer 0.
        @pl.when(l == 0)
        def _():
            act_ref[...] = x_ref[0].astype(jnp.float32)

        x = act_ref[...]                                            # (S, E) f32

        # Pre-norm attention LayerNorm (eps = 0 for layer 0, per module spec).
        attn_eps = jnp.where(l == 0, jnp.float32(0.0), jnp.float32(ln_eps))
        h = _layer_norm(x, ln1g_ref[0], ln1b_ref[0], attn_eps)      # (S, E) f32

        # Fused QKV projection: one bf16 MXU matmul, f32 accumulation.
        qkv = jnp.dot(h.astype(jnp.bfloat16), wqkv_ref[0],
                      preferred_element_type=jnp.float32) + bqkv_ref[0]   # (S, 3HD)

        def split_heads(t):                                  # (S, HD) -> (H, S, D)
            return t.reshape(seq_len, n_heads, d_qkv).transpose(1, 0, 2)

        qh_all = split_heads(qkv[:, :hd]).astype(jnp.bfloat16)       # (H, S, D)
        kh = split_heads(qkv[:, hd:2 * hd]).astype(jnp.bfloat16)     # (H, S, D)
        vh = split_heads(qkv[:, 2 * hd:]).astype(jnp.bfloat16)       # (H, S, D)

        wo, bo = wo_ref[0], bo_ref[0]
        g2, b2 = ln2g_ref[0], ln2b_ref[0]
        w1, bm1 = w1_ref[0], bm1_ref[0]
        w2, bm2 = w2_ref[0], bm2_ref[0]

        def layer_tail(qh, resid):
            # qh: (H, Sq, D) bf16, resid: (Sq, E) f32  ->  (Sq, E) f32
            sq = qh.shape[1]
            s = jnp.einsum("hqd,hkd->hqk", qh, kh,
                           preferred_element_type=jnp.float32) * scale    # (H,Sq,S)
            s = s - jnp.max(s, axis=-1, keepdims=True)
            p = jnp.exp(s)
            p = p * pl.reciprocal(jnp.sum(p, axis=-1, keepdims=True), approx=True)
            ctx = jnp.einsum("hqk,hkd->hqd", p.astype(jnp.bfloat16), vh,
                             preferred_element_type=jnp.float32)          # (H,Sq,D)
            ctx = ctx.transpose(1, 0, 2).reshape(sq, hd)                  # (Sq, H*D)
            attn = jnp.dot(ctx.astype(jnp.bfloat16), wo,
                           preferred_element_type=jnp.float32) + bo
            x1 = resid + attn
            h2 = _layer_norm(x1, g2, b2, jnp.float32(ln_eps))
            m = jnp.dot(h2.astype(jnp.bfloat16), w1,
                        preferred_element_type=jnp.float32) + bm1
            m = jnp.maximum(m, 0.0)                                       # ReLU MLP
            m = jnp.dot(m.astype(jnp.bfloat16), w2,
                        preferred_element_type=jnp.float32) + bm2
            return x1 + m

        # All layers except the last: full-sequence self-attention; carry result.
        @pl.when(l < n_l - 1)
        def _():
            act_ref[...] = layer_tail(qh_all, x)

        # Last layer: only token 0 is used as query (q_idx=0); emit (1, E).
        @pl.when(l == n_l - 1)
        def _():
            o_ref[0] = layer_tail(qh_all[:, 0:1, :], x[0:1, :]).astype(o_ref.dtype)

    return kernel


def tf_encoder(x, layer_params, *, n_heads, d_qkv, layer_norm_eps):
    """x: (B, S, E) float. Returns (B, 1, E): last layer queried at token 0."""
    B, S, E = x.shape
    L = len(layer_params)

    def stack(name, dtype=None):
        w = jnp.stack([p[name] for p in layer_params])
        return w if dtype is None else w.astype(dtype)

    # Stack per-layer weights along a leading layer axis; bf16 for MXU operand
    # matrices, f32 for biases / LayerNorm affine params (applied in f32).
    wqkv = jnp.concatenate([stack("wq"), stack("wk"), stack("wv")],
                           axis=-1).astype(jnp.bfloat16)           # (L, E, 3*H*D)
    bqkv = jnp.concatenate([stack("bq"), stack("bk"), stack("bv")],
                           axis=-1)                                # (L, 1, 3*H*D)
    inputs = (
        x,
        stack("ln1_g"), stack("ln1_b"),
        wqkv, bqkv,
        stack("wo", jnp.bfloat16), stack("bo"),
        stack("ln2_g"), stack("ln2_b"),
        stack("w1", jnp.bfloat16), stack("bm1"),
        stack("w2", jnp.bfloat16), stack("bm2"),
    )

    def _wspec(arr):   # per-layer weight block, indexed by the layer grid axis
        return pl.BlockSpec((1,) + arr.shape[1:], lambda b, l: (l, 0, 0))

    in_specs = [pl.BlockSpec((1, S, E), lambda b, l: (b, 0, 0))]
    in_specs += [_wspec(w) for w in inputs[1:]]
    out_spec = pl.BlockSpec((1, 1, E), lambda b, l: (b, 0, 0))

    kernel = _make_encoder_kernel(n_heads, d_qkv, S, layer_norm_eps)

    return pl.pallas_call(
        kernel,
        out_shape=jax.ShapeDtypeStruct((B, 1, E), x.dtype),
        grid_spec=pltpu.PrefetchScalarGridSpec(
            num_scalar_prefetch=0,
            grid=(B, L),
            in_specs=in_specs,
            out_specs=out_spec,
            scratch_shapes=[pltpu.VMEM((S, E), jnp.float32)],
        ),
        compiler_params=pltpu.CompilerParams(
            dimension_semantics=("parallel", "arbitrary"),
            vmem_limit_bytes=48 * 1024 * 1024,
        ),
    )(*inputs)


# ----------------------- pure-JAX f32 reference (for checking) -----------------------
def _ref_layer(x, p, n_heads, d_qkv, attn_eps, ffn_eps, q_idx=None):
    scale = 1.0 / math.sqrt(d_qkv)
    h = _layer_norm(x, p["ln1_g"], p["ln1_b"], attn_eps)
    q_in = h if q_idx is None else h[:, q_idx:q_idx + 1, :]
    resid = x if q_idx is None else x[:, q_idx:q_idx + 1, :]
    q = q_in @ p["wq"] + p["bq"]
    k = h @ p["wk"] + p["bk"]
    v = h @ p["wv"] + p["bv"]
    B, Sq, _ = q.shape
    S = k.shape[1]
    qh = q.reshape(B, Sq, n_heads, d_qkv).transpose(0, 2, 1, 3)
    kh = k.reshape(B, S, n_heads, d_qkv).transpose(0, 2, 1, 3)
    vh = v.reshape(B, S, n_heads, d_qkv).transpose(0, 2, 1, 3)
    s = jnp.einsum("bhqd,bhkd->bhqk", qh, kh) * scale
    pattn = jax.nn.softmax(s, axis=-1)
    oh = jnp.einsum("bhqk,bhkd->bhqd", pattn, vh)
    attn = oh.transpose(0, 2, 1, 3).reshape(B, Sq, n_heads * d_qkv) @ p["wo"] + p["bo"]
    x1 = resid + attn
    h2 = _layer_norm(x1, p["ln2_g"], p["ln2_b"], ffn_eps)
    m = jnp.maximum(h2 @ p["w1"] + p["bm1"], 0.0) @ p["w2"] + p["bm2"]
    return x1 + m


def _ref_encoder(x, layer_params, n_heads, d_qkv, eps):
    n = len(layer_params)
    for i in range(n - 1):
        x = _ref_layer(x, layer_params[i], n_heads, d_qkv,
                       eps if i != 0 else 0.0, eps)
    i = n - 1
    return _ref_layer(x, layer_params[i], n_heads, d_qkv,
                      eps if i != 0 else 0.0, eps, q_idx=0)


# ----------------------------------- main -----------------------------------
def _init_layer_params(key, emb_dim, d_qkv, n_heads, mlp_dim):
    ks = jax.random.split(key, 8)
    hd = n_heads * d_qkv
    std = 0.02
    return {
        "ln1_g": jnp.ones((1, emb_dim), jnp.float32),
        "ln1_b": jnp.zeros((1, emb_dim), jnp.float32),
        "wq": std * jax.random.normal(ks[0], (emb_dim, hd), jnp.float32),
        "bq": jnp.zeros((1, hd), jnp.float32),
        "wk": std * jax.random.normal(ks[1], (emb_dim, hd), jnp.float32),
        "bk": jnp.zeros((1, hd), jnp.float32),
        "wv": std * jax.random.normal(ks[2], (emb_dim, hd), jnp.float32),
        "bv": jnp.zeros((1, hd), jnp.float32),
        "wo": std * jax.random.normal(ks[3], (hd, emb_dim), jnp.float32),
        "bo": jnp.zeros((1, emb_dim), jnp.float32),
        "ln2_g": jnp.ones((1, emb_dim), jnp.float32),
        "ln2_b": jnp.zeros((1, emb_dim), jnp.float32),
        "w1": std * jax.random.normal(ks[4], (emb_dim, mlp_dim), jnp.float32),
        "bm1": jnp.zeros((1, mlp_dim), jnp.float32),
        "w2": std * jax.random.normal(ks[5], (mlp_dim, emb_dim), jnp.float32),
        "bm2": jnp.zeros((1, emb_dim), jnp.float32),
    }


if __name__ == "__main__":
    # Small, lane-dense config consistent with the module (E = n_heads * d_qkv = 128).
    B, S = 2, 8
    emb_dim, d_qkv, n_heads = 128, 32, 4
    n_layers, mlp_dim, eps = 2, 256, 1e-5

    key = jax.random.PRNGKey(0)
    kx, *kl = jax.random.split(key, 1 + n_layers)
    x = jax.random.normal(kx, (B, S, emb_dim), jnp.float32)
    layer_params = [
        _init_layer_params(kl[i], emb_dim, d_qkv, n_heads, mlp_dim)
        for i in range(n_layers)
    ]

    out = tf_encoder(x, layer_params, n_heads=n_heads, d_qkv=d_qkv,
                     layer_norm_eps=eps)
    out = jax.block_until_ready(out)

    ref = _ref_encoder(x, layer_params, n_heads, d_qkv, eps)
    assert out.shape == (B, 1, emb_dim), out.shape
    err = float(jnp.max(jnp.abs(out - ref)))
    # bf16 MXU operands in the kernel vs f32 reference -> relaxed tolerance.
    assert err < 2e-2, err

    print("KERNEL_OK")
</pallas_src>

<mosaic_0001>
module attributes {stable_mosaic.version = 11 : i64} {
  func.func @kernel(%arg0: i32, %arg1: i32, %arg2: memref<1x8x128xf32, #tpu.memory_space<vmem>>, %arg3: memref<1x1x128xf32, #tpu.memory_space<vmem>>, %arg4: memref<1x1x128xf32, #tpu.memory_space<vmem>>, %arg5: memref<1x128x384xbf16, #tpu.memory_space<vmem>>, %arg6: memref<1x1x384xf32, #tpu.memory_space<vmem>>, %arg7: memref<1x128x128xbf16, #tpu.memory_space<vmem>>, %arg8: memref<1x1x128xf32, #tpu.memory_space<vmem>>, %arg9: memref<1x1x128xf32, #tpu.memory_space<vmem>>, %arg10: memref<1x1x128xf32, #tpu.memory_space<vmem>>, %arg11: memref<1x128x256xbf16, #tpu.memory_space<vmem>>, %arg12: memref<1x1x256xf32, #tpu.memory_space<vmem>>, %arg13: memref<1x256x128xbf16, #tpu.memory_space<vmem>>, %arg14: memref<1x1x128xf32, #tpu.memory_space<vmem>>, %arg15: memref<1x1x128xf32, #tpu.memory_space<vmem>>, %arg16: memref<8x128xf32, #tpu.memory_space<vmem>>) attributes {dimension_semantics = [#tpu.dimension_semantics<parallel>, #tpu.dimension_semantics<arbitrary>], iteration_bounds = array<i64: 2, 2>, scalar_prefetch = 0 : i64, scratch_operands = 1 : i64, tpu.core_type = #tpu.core_type<tc>, window_params = [{transform_indices = @transform_0, window_bounds = array<i64: 1, 8, 128>}, {transform_indices = @transform_1, window_bounds = array<i64: 1, 1, 128>}, {transform_indices = @transform_2, window_bounds = array<i64: 1, 1, 128>}, {transform_indices = @transform_3, window_bounds = array<i64: 1, 128, 384>}, {transform_indices = @transform_4, window_bounds = array<i64: 1, 1, 384>}, {transform_indices = @transform_5, window_bounds = array<i64: 1, 128, 128>}, {transform_indices = @transform_6, window_bounds = array<i64: 1, 1, 128>}, {transform_indices = @transform_7, window_bounds = array<i64: 1, 1, 128>}, {transform_indices = @transform_8, window_bounds = array<i64: 1, 1, 128>}, {transform_indices = @transform_9, window_bounds = array<i64: 1, 128, 256>}, {transform_indices = @transform_10, window_bounds = array<i64: 1, 1, 256>}, {transform_indices = @transform_11, window_bounds = array<i64: 1, 256, 128>}, {transform_indices = @transform_12, window_bounds = array<i64: 1, 1, 128>}, {transform_indices = @transform_13, window_bounds = array<i64: 1, 1, 128>}]} {
    %c0_i32 = arith.constant 0 : i32
    %0 = arith.cmpi eq, %arg1, %c0_i32 : i32
    %1 = arith.extui %0 : i1 to i32
    %c0_i32_0 = arith.constant 0 : i32
    %2 = arith.cmpi ne, %1, %c0_i32_0 : i32
    scf.if %2 {
      %c0_48 = arith.constant 0 : index
      %c0_49 = arith.constant 0 : index
      %c0_50 = arith.constant 0 : index
      %74 = vector.load %arg2[%c0_48, %c0_49, %c0_50] : memref<1x8x128xf32, #tpu.memory_space<vmem>>, vector<1x8x128xf32>
      %75 = vector.shape_cast %74 : vector<1x8x128xf32> to vector<8x128xf32>
      %c0_51 = arith.constant 0 : index
      %c0_52 = arith.constant 0 : index
      %76 = vector.load %arg16[%c0_51, %c0_52] : memref<8x128xf32, #tpu.memory_space<vmem>>, vector<8x128xf32>
      tpu.vector_store %arg16[%c0_51, %c0_52], %75 {strides = array<i32>} : memref<8x128xf32, #tpu.memory_space<vmem>>, vector<8x128xf32>,
    } else {
    }
    %c0 = arith.constant 0 : index
    %c0_1 = arith.constant 0 : index
    %3 = vector.load %arg16[%c0, %c0_1] : memref<8x128xf32, #tpu.memory_space<vmem>>, vector<8x128xf32>
    %c0_i32_2 = arith.constant 0 : i32
    %4 = arith.cmpi eq, %arg1, %c0_i32_2 : i32
    %cst = arith.constant 0.000000e+00 : f32
    %cst_3 = arith.constant 9.99999974E-6 : f32
    %5 = arith.select %4, %cst, %cst_3 : f32
    %c0_4 = arith.constant 0 : index
    %c0_5 = arith.constant 0 : index
    %c0_6 = arith.constant 0 : index
    %6 = vector.load %arg3[%c0_4, %c0_5, %c0_6] : memref<1x1x128xf32, #tpu.memory_space<vmem>>, vector<1x1x128xf32>
    %7 = vector.shape_cast %6 : vector<1x1x128xf32> to vector<1x128xf32>
    %c0_7 = arith.constant 0 : index
    %c0_8 = arith.constant 0 : index
    %c0_9 = arith.constant 0 : index
    %8 = vector.load %arg4[%c0_7, %c0_8, %c0_9] : memref<1x1x128xf32, #tpu.memory_space<vmem>>, vector<1x1x128xf32>
    %9 = vector.shape_cast %8 : vector<1x1x128xf32> to vector<1x128xf32>
    %cst_10 = arith.constant dense<0.000000e+00> : vector<8xf32>
    %10 = vector.multi_reduction <add>, %3, %cst_10 [1] : vector<8x128xf32> to vector<8xf32>
    %11 = vector.shape_cast %10 : vector<8xf32> to vector<8x1xf32>
    %cst_11 = arith.constant 1.280000e+02 : f32
    %12 = vector.broadcast %cst_11 : f32 to vector<8x1xf32>
    %13 = arith.divf %11, %12 : vector<8x1xf32>
    %14 = vector.broadcast %13 : vector<8x1xf32> to vector<8x128xf32>
    %15 = arith.subf %3, %14 : vector<8x128xf32>
    %16 = arith.mulf %15, %15 : vector<8x128xf32>
    %cst_12 = arith.constant dense<0.000000e+00> : vector<8xf32>
    %17 = vector.multi_reduction <add>, %16, %cst_12 [1] : vector<8x128xf32> to vector<8xf32>
    %18 = vector.shape_cast %17 : vector<8xf32> to vector<8x1xf32>
    %cst_13 = arith.constant 1.280000e+02 : f32
    %19 = vector.broadcast %cst_13 : f32 to vector<8x1xf32>
    %20 = arith.divf %18, %19 : vector<8x1xf32>
    %21 = vector.broadcast %13 : vector<8x1xf32> to vector<8x128xf32>
    %22 = arith.subf %3, %21 : vector<8x128xf32>
    %23 = vector.broadcast %5 : f32 to vector<8x1xf32>
    %24 = arith.addf %20, %23 : vector<8x1xf32>
    %25 = math.rsqrt %24 : vector<8x1xf32>
    %26 = vector.broadcast %25 : vector<8x1xf32> to vector<8x128xf32>
    %27 = arith.mulf %22, %26 : vector<8x128xf32>
    %28 = vector.broadcast %7 : vector<1x128xf32> to vector<8x128xf32>
    %29 = arith.mulf %27, %28 : vector<8x128xf32>
    %30 = vector.broadcast %9 : vector<1x128xf32> to vector<8x128xf32>
    %31 = arith.addf %29, %30 : vector<8x128xf32>
    %32 = arith.truncf %31 : vector<8x128xf32> to vector<8x128xbf16>
    %c0_14 = arith.constant 0 : index
    %c0_15 = arith.constant 0 : index
    %c0_16 = arith.constant 0 : index
    %33 = vector.load %arg5[%c0_14, %c0_15, %c0_16] : memref<1x128x384xbf16, #tpu.memory_space<vmem>>, vector<1x128x384xbf16>
    %34 = vector.shape_cast %33 : vector<1x128x384xbf16> to vector<128x384xbf16>
    %cst_17 = arith.constant dense<0.000000e+00> : vector<8x384xf32>
    %35 = tpu.matmul %32, %34, %cst_17 {dimension_numbers = #tpu.dot_dimension_numbers<[1], [0], [0], [1], [0, 0, 1, 1], [], []>} : vector<8x128xbf16>, vector<128x384xbf16>, vector<8x384xf32> -> vector<8x384xf32>
    %c0_18 = arith.constant 0 : index
    %c0_19 = arith.constant 0 : index
    %c0_20 = arith.constant 0 : index
    %36 = vector.load %arg6[%c0_18, %c0_19, %c0_20] : memref<1x1x384xf32, #tpu.memory_space<vmem>>, vector<1x1x384xf32>
    %37 = vector.shape_cast %36 : vector<1x1x384xf32> to vector<1x384xf32>
    %38 = vector.broadcast %37 : vector<1x384xf32> to vector<8x384xf32>
    %39 = arith.addf %35, %38 : vector<8x384xf32>
    %40 = vector.extract_strided_slice %39 {offsets = [0, 0], sizes = [8, 128], strides = [1, 1]} : vector<8x384xf32> to vector<8x128xf32>
    %41 = vector.shape_cast %40 : vector<8x128xf32> to vector<8x4x32xf32>
    %42 = tpu.transpose %41, [1, 0, 2] : vector<8x4x32xf32> -> vector<4x8x32xf32>
    %43 = arith.truncf %42 : vector<4x8x32xf32> to vector<4x8x32xbf16>
    %44 = vector.extract_strided_slice %39 {offsets = [0, 128], sizes = [8, 128], strides = [1, 1]} : vector<8x384xf32> to vector<8x128xf32>
    %45 = vector.shape_cast %44 : vector<8x128xf32> to vector<8x4x32xf32>
    %46 = tpu.transpose %45, [1, 0, 2] : vector<8x4x32xf32> -> vector<4x8x32xf32>
    %47 = arith.truncf %46 : vector<4x8x32xf32> to vector<4x8x32xbf16>
    %48 = vector.extract_strided_slice %39 {offsets = [0, 256], sizes = [8, 128], strides = [1, 1]} : vector<8x384xf32> to vector<8x128xf32>
    %49 = vector.shape_cast %48 : vector<8x128xf32> to vector<8x4x32xf32>
    %50 = tpu.transpose %49, [1, 0, 2] : vector<8x4x32xf32> -> vector<4x8x32xf32>
    %51 = arith.truncf %50 : vector<4x8x32xf32> to vector<4x8x32xbf16>
    %c0_21 = arith.constant 0 : index
    %c0_22 = arith.constant 0 : index
    %c0_23 = arith.constant 0 : index
    %52 = vector.load %arg7[%c0_21, %c0_22, %c0_23] : memref<1x128x128xbf16, #tpu.memory_space<vmem>>, vector<1x128x128xbf16>
    %53 = vector.shape_cast %52 : vector<1x128x128xbf16> to vector<128x128xbf16>
    %c0_24 = arith.constant 0 : index
    %c0_25 = arith.constant 0 : index
    %c0_26 = arith.constant 0 : index
    %54 = vector.load %arg8[%c0_24, %c0_25, %c0_26] : memref<1x1x128xf32, #tpu.memory_space<vmem>>, vector<1x1x128xf32>
    %55 = vector.shape_cast %54 : vector<1x1x128xf32> to vector<1x128xf32>
    %c0_27 = arith.constant 0 : index
    %c0_28 = arith.constant 0 : index
    %c0_29 = arith.constant 0 : index
    %56 = vector.load %arg9[%c0_27, %c0_28, %c0_29] : memref<1x1x128xf32, #tpu.memory_space<vmem>>, vector<1x1x128xf32>
    %57 = vector.shape_cast %56 : vector<1x1x128xf32> to vector<1x128xf32>
    %c0_30 = arith.constant 0 : index
    %c0_31 = arith.constant 0 : index
    %c0_32 = arith.constant 0 : index
    %58 = vector.load %arg10[%c0_30, %c0_31, %c0_32] : memref<1x1x128xf32, #tpu.memory_space<vmem>>, vector<1x1x128xf32>
    %59 = vector.shape_cast %58 : vector<1x1x128xf32> to vector<1x128xf32>
    %c0_33 = arith.constant 0 : index
    %c0_34 = arith.constant 0 : index
    %c0_35 = arith.constant 0 : index
    %60 = vector.load %arg11[%c0_33, %c0_34, %c0_35] : memref<1x128x256xbf16, #tpu.memory_space<vmem>>, vector<1x128x256xbf16>
    %61 = vector.shape_cast %60 : vector<1x128x256xbf16> to vector<128x256xbf16>
    %c0_36 = arith.constant 0 : index
    %c0_37 = arith.constant 0 : index
    %c0_38 = arith.constant 0 : index
    %62 = vector.load %arg12[%c0_36, %c0_37, %c0_38] : memref<1x1x256xf32, #tpu.memory_space<vmem>>, vector<1x1x256xf32>
    %63 = vector.shape_cast %62 : vector<1x1x256xf32> to vector<1x256xf32>
    %c0_39 = arith.constant 0 : index
    %c0_40 = arith.constant 0 : index
    %c0_41 = arith.constant 0 : index
    %64 = vector.load %arg13[%c0_39, %c0_40, %c0_41] : memref<1x256x128xbf16, #tpu.memory_space<vmem>>, vector<1x256x128xbf16>
    %65 = vector.shape_cast %64 : vector<1x256x128xbf16> to vector<256x128xbf16>
    %c0_42 = arith.constant 0 : index
    %c0_43 = arith.constant 0 : index
    %c0_44 = arith.constant 0 : index
    %66 = vector.load %arg14[%c0_42, %c0_43, %c0_44] : memref<1x1x128xf32, #tpu.memory_space<vmem>>, vector<1x1x128xf32>
    %67 = vector.shape_cast %66 : vector<1x1x128xf32> to vector<1x128xf32>
    %c1_i32 = arith.constant 1 : i32
    %68 = arith.cmpi slt, %arg1, %c1_i32 : i32
    %69 = arith.extui %68 : i1 to i32
    %c0_i32_45 = arith.constant 0 : i32
    %70 = arith.cmpi ne, %69, %c0_i32_45 : i32
    scf.if %70 {
      "tpu.trace_start"() <{level = 10 : i32, message = "hqd,hkd->hqk"}> : () -> ()
      %cst_48 = arith.constant dense<0.000000e+00> : vector<4x8x8xf32>
      %74 = tpu.matmul %43, %47, %cst_48 {dimension_numbers = #tpu.dot_dimension_numbers<[2], [2], [1], [1], [0, 0, 0, 1, 1, 1], [0], [0]>} : vector<4x8x32xbf16>, vector<4x8x32xbf16>, vector<4x8x8xf32> -> vector<4x8x8xf32>
      "tpu.trace_stop"() : () -> ()
      %cst_49 = arith.constant 0.176776692 : f32
      %75 = vector.broadcast %cst_49 : f32 to vector<4x8x8xf32>
      %76 = arith.mulf %74, %75 : vector<4x8x8xf32>
      %cst_50 = arith.constant dense<0xFF800000> : vector<4x8xf32>
      %77 = vector.multi_reduction <maximumf>, %76, %cst_50 [2] : vector<4x8x8xf32> to vector<4x8xf32>
      %78 = vector.shape_cast %77 : vector<4x8xf32> to vector<4x8x1xf32>
      %79 = vector.broadcast %78 : vector<4x8x1xf32> to vector<4x8x8xf32>
      %80 = arith.subf %76, %79 : vector<4x8x8xf32>
      %81 = math.exp %80 : vector<4x8x8xf32>
      %cst_51 = arith.constant dense<0.000000e+00> : vector<4x8xf32>
      %82 = vector.multi_reduction <add>, %81, %cst_51 [2] : vector<4x8x8xf32> to vector<4x8xf32>
      %83 = vector.shape_cast %82 : vector<4x8xf32> to vector<4x8x1xf32>
      %84 = tpu.reciprocal %83 {approx = true} : vector<4x8x1xf32> -> vector<4x8x1xf32>
      %85 = vector.broadcast %84 : vector<4x8x1xf32> to vector<4x8x8xf32>
      %86 = arith.mulf %81, %85 : vector<4x8x8xf32>
      %87 = arith.truncf %86 : vector<4x8x8xf32> to vector<4x8x8xbf16>
      "tpu.trace_start"() <{level = 10 : i32, message = "hqk,hkd->hqd"}> : () -> ()
      %cst_52 = arith.constant dense<0.000000e+00> : vector<4x8x32xf32>
      %88 = tpu.matmul %87, %51, %cst_52 {dimension_numbers = #tpu.dot_dimension_numbers<[2], [1], [1], [2], [0, 0, 0, 1, 1, 2], [0], [0]>} : vector<4x8x8xbf16>, vector<4x8x32xbf16>, vector<4x8x32xf32> -> vector<4x8x32xf32>
      "tpu.trace_stop"() : () -> ()
      %89 = tpu.transpose %88, [1, 0, 2] : vector<4x8x32xf32> -> vector<8x4x32xf32>
      %90 = vector.shape_cast %89 : vector<8x4x32xf32> to vector<8x128xf32>
      %91 = arith.truncf %90 : vector<8x128xf32> to vector<8x128xbf16>
      %cst_53 = arith.constant dense<0.000000e+00> : vector<8x128xf32>
      %92 = tpu.matmul %91, %53, %cst_53 {dimension_numbers = #tpu.dot_dimension_numbers<[1], [0], [0], [1], [0, 0, 1, 1], [], []>} : vector<8x128xbf16>, vector<128x128xbf16>, vector<8x128xf32> -> vector<8x128xf32>
      %93 = vector.broadcast %55 : vector<1x128xf32> to vector<8x128xf32>
      %94 = arith.addf %92, %93 : vector<8x128xf32>
      %95 = arith.addf %3, %94 : vector<8x128xf32>
      %cst_54 = arith.constant dense<0.000000e+00> : vector<8xf32>
      %96 = vector.multi_reduction <add>, %95, %cst_54 [1] : vector<8x128xf32> to vector<8xf32>
      %97 = vector.shape_cast %96 : vector<8xf32> to vector<8x1xf32>
      %cst_55 = arith.constant 1.280000e+02 : f32
      %98 = vector.broadcast %cst_55 : f32 to vector<8x1xf32>
      %99 = arith.divf %97, %98 : vector<8x1xf32>
      %100 = vector.broadcast %99 : vector<8x1xf32> to vector<8x128xf32>
      %101 = arith.subf %95, %100 : vector<8x128xf32>
      %102 = arith.mulf %101, %101 : vector<8x128xf32>
      %cst_56 = arith.constant dense<0.000000e+00> : vector<8xf32>
      %103 = vector.multi_reduction <add>, %102, %cst_56 [1] : vector<8x128xf32> to vector<8xf32>
      %104 = vector.shape_cast %103 : vector<8xf32> to vector<8x1xf32>
      %cst_57 = arith.constant 1.280000e+02 : f32
      %105 = vector.broadcast %cst_57 : f32 to vector<8x1xf32>
      %106 = arith.divf %104, %105 : vector<8x1xf32>
      %107 = vector.broadcast %99 : vector<8x1xf32> to vector<8x128xf32>
      %108 = arith.subf %95, %107 : vector<8x128xf32>
      %cst_58 = arith.constant 9.99999974E-6 : f32
      %109 = vector.broadcast %cst_58 : f32 to vector<8x1xf32>
      %110 = arith.addf %106, %109 : vector<8x1xf32>
      %111 = math.rsqrt %110 : vector<8x1xf32>
      %112 = vector.broadcast %111 : vector<8x1xf32> to vector<8x128xf32>
      %113 = arith.mulf %108, %112 : vector<8x128xf32>
      %114 = vector.broadcast %57 : vector<1x128xf32> to vector<8x128xf32>
      %115 = arith.mulf %113, %114 : vector<8x128xf32>
      %116 = vector.broadcast %59 : vector<1x128xf32> to vector<8x128xf32>
      %117 = arith.addf %115, %116 : vector<8x128xf32>
      %118 = arith.truncf %117 : vector<8x128xf32> to vector<8x128xbf16>
      %cst_59 = arith.constant dense<0.000000e+00> : vector<8x256xf32>
      %119 = tpu.matmul %118, %61, %cst_59 {dimension_numbers = #tpu.dot_dimension_numbers<[1], [0], [0], [1], [0, 0, 1, 1], [], []>} : vector<8x128xbf16>, vector<128x256xbf16>, vector<8x256xf32> -> vector<8x256xf32>
      %120 = vector.broadcast %63 : vector<1x256xf32> to vector<8x256xf32>
      %121 = arith.addf %119, %120 : vector<8x256xf32>
      %cst_60 = arith.constant 0.000000e+00 : f32
      %122 = vector.broadcast %cst_60 : f32 to vector<8x256xf32>
      %123 = arith.maximumf %121, %122 : vector<8x256xf32>
      %124 = arith.truncf %123 : vector<8x256xf32> to vector<8x256xbf16>
      %cst_61 = arith.constant dense<0.000000e+00> : vector<8x128xf32>
      %125 = tpu.matmul %124, %65, %cst_61 {dimension_numbers = #tpu.dot_dimension_numbers<[1], [0], [0], [1], [0, 0, 1, 1], [], []>} : vector<8x256xbf16>, vector<256x128xbf16>, vector<8x128xf32> -> vector<8x128xf32>
      %126 = vector.broadcast %67 : vector<1x128xf32> to vector<8x128xf32>
      %127 = arith.addf %125, %126 : vector<8x128xf32>
      %128 = arith.addf %95, %127 : vector<8x128xf32>
      %c0_62 = arith.constant 0 : index
      %c0_63 = arith.constant 0 : index
      %129 = vector.load %arg16[%c0_62, %c0_63] : memref<8x128xf32, #tpu.memory_space<vmem>>, vector<8x128xf32>
      tpu.vector_store %arg16[%c0_62, %c0_63], %128 {strides = array<i32>} : memref<8x128xf32, #tpu.memory_space<vmem>>, vector<8x128xf32>,
    } else {
    }
    %c1_i32_46 = arith.constant 1 : i32
    %71 = arith.cmpi eq, %arg1, %c1_i32_46 : i32
    %72 = arith.extui %71 : i1 to i32
    %c0_i32_47 = arith.constant 0 : i32
    %73 = arith.cmpi ne, %72, %c0_i32_47 : i32
    scf.if %73 {
      %74 = vector.extract_strided_slice %43 {offsets = [0, 0, 0], sizes = [4, 1, 32], strides = [1, 1, 1]} : vector<4x8x32xbf16> to vector<4x1x32xbf16>
      %75 = vector.extract_strided_slice %3 {offsets = [0, 0], sizes = [1, 128], strides = [1, 1]} : vector<8x128xf32> to vector<1x128xf32>
      "tpu.trace_start"() <{level = 10 : i32, message = "hqd,hkd->hqk"}> : () -> ()
      %cst_48 = arith.constant dense<0.000000e+00> : vector<4x1x8xf32>
      %76 = tpu.matmul %74, %47, %cst_48 {dimension_numbers = #tpu.dot_dimension_numbers<[2], [2], [1], [1], [0, 0, 0, 1, 1, 1], [0], [0]>} : vector<4x1x32xbf16>, vector<4x8x32xbf16>, vector<4x1x8xf32> -> vector<4x1x8xf32>
      "tpu.trace_stop"() : () -> ()
      %cst_49 = arith.constant 0.176776692 : f32
      %77 = vector.broadcast %cst_49 : f32 to vector<4x1x8xf32>
      %78 = arith.mulf %76, %77 : vector<4x1x8xf32>
      %cst_50 = arith.constant dense<0xFF800000> : vector<4x1xf32>
      %79 = vector.multi_reduction <maximumf>, %78, %cst_50 [2] : vector<4x1x8xf32> to vector<4x1xf32>
      %80 = vector.shape_cast %79 : vector<4x1xf32> to vector<4x1x1xf32>
      %81 = vector.broadcast %80 : vector<4x1x1xf32> to vector<4x1x8xf32>
      %82 = arith.subf %78, %81 : vector<4x1x8xf32>
      %83 = math.exp %82 : vector<4x1x8xf32>
      %cst_51 = arith.constant dense<0.000000e+00> : vector<4x1xf32>
      %84 = vector.multi_reduction <add>, %83, %cst_51 [2] : vector<4x1x8xf32> to vector<4x1xf32>
      %85 = vector.shape_cast %84 : vector<4x1xf32> to vector<4x1x1xf32>
      %86 = tpu.reciprocal %85 {approx = true} : vector<4x1x1xf32> -> vector<4x1x1xf32>
      %87 = vector.broadcast %86 : vector<4x1x1xf32> to vector<4x1x8xf32>
      %88 = arith.mulf %83, %87 : vector<4x1x8xf32>
      %89 = arith.truncf %88 : vector<4x1x8xf32> to vector<4x1x8xbf16>
      "tpu.trace_start"() <{level = 10 : i32, message = "hqk,hkd->hqd"}> : () -> ()
      %cst_52 = arith.constant dense<0.000000e+00> : vector<4x1x32xf32>
      %90 = tpu.matmul %89, %51, %cst_52 {dimension_numbers = #tpu.dot_dimension_numbers<[2], [1], [1], [2], [0, 0, 0, 1, 1, 2], [0], [0]>} : vector<4x1x8xbf16>, vector<4x8x32xbf16>, vector<4x1x32xf32> -> vector<4x1x32xf32>
      "tpu.trace_stop"() : () -> ()
      %91 = tpu.transpose %90, [1, 0, 2] : vector<4x1x32xf32> -> vector<1x4x32xf32>
      %92 = vector.shape_cast %91 : vector<1x4x32xf32> to vector<1x128xf32>
      %93 = arith.truncf %92 : vector<1x128xf32> to vector<1x128xbf16>
      %cst_53 = arith.constant dense<0.000000e+00> : vector<1x128xf32>
      %94 = tpu.matmul %93, %53, %cst_53 {dimension_numbers = #tpu.dot_dimension_numbers<[1], [0], [0], [1], [0, 0, 1, 1], [], []>} : vector<1x128xbf16>, vector<128x128xbf16>, vector<1x128xf32> -> vector<1x128xf32>
      %95 = arith.addf %94, %55 : vector<1x128xf32>
      %96 = arith.addf %75, %95 : vector<1x128xf32>
      %cst_54 = arith.constant dense<0.000000e+00> : vector<1xf32>
      %97 = vector.multi_reduction <add>, %96, %cst_54 [1] : vector<1x128xf32> to vector<1xf32>
      %98 = vector.shape_cast %97 : vector<1xf32> to vector<1x1xf32>
      %cst_55 = arith.constant 1.280000e+02 : f32
      %99 = vector.broadcast %cst_55 : f32 to vector<1x1xf32>
      %100 = arith.divf %98, %99 : vector<1x1xf32>
      %101 = vector.broadcast %100 : vector<1x1xf32> to vector<1x128xf32>
      %102 = arith.subf %96, %101 : vector<1x128xf32>
      %103 = arith.mulf %102, %102 : vector<1x128xf32>
      %cst_56 = arith.constant dense<0.000000e+00> : vector<1xf32>
      %104 = vector.multi_reduction <add>, %103, %cst_56 [1] : vector<1x128xf32> to vector<1xf32>
      %105 = vector.shape_cast %104 : vector<1xf32> to vector<1x1xf32>
      %cst_57 = arith.constant 1.280000e+02 : f32
      %106 = vector.broadcast %cst_57 : f32 to vector<1x1xf32>
      %107 = arith.divf %105, %106 : vector<1x1xf32>
      %108 = vector.broadcast %100 : vector<1x1xf32> to vector<1x128xf32>
      %109 = arith.subf %96, %108 : vector<1x128xf32>
      %cst_58 = arith.constant 9.99999974E-6 : f32
      %110 = vector.broadcast %cst_58 : f32 to vector<1x1xf32>
      %111 = arith.addf %107, %110 : vector<1x1xf32>
      %112 = math.rsqrt %111 : vector<1x1xf32>
      %113 = vector.broadcast %112 : vector<1x1xf32> to vector<1x128xf32>
      %114 = arith.mulf %109, %113 : vector<1x128xf32>
      %115 = arith.mulf %114, %57 : vector<1x128xf32>
      %116 = arith.addf %115, %59 : vector<1x128xf32>
      %117 = arith.truncf %116 : vector<1x128xf32> to vector<1x128xbf16>
      %cst_59 = arith.constant dense<0.000000e+00> : vector<1x256xf32>
      %118 = tpu.matmul %117, %61, %cst_59 {dimension_numbers = #tpu.dot_dimension_numbers<[1], [0], [0], [1], [0, 0, 1, 1], [], []>} : vector<1x128xbf16>, vector<128x256xbf16>, vector<1x256xf32> -> vector<1x256xf32>
      %119 = arith.addf %118, %63 : vector<1x256xf32>
      %cst_60 = arith.constant 0.000000e+00 : f32
      %120 = vector.broadcast %cst_60 : f32 to vector<1x256xf32>
      %121 = arith.maximumf %119, %120 : vector<1x256xf32>
      %122 = arith.truncf %121 : vector<1x256xf32> to vector<1x256xbf16>
      %cst_61 = arith.constant dense<0.000000e+00> : vector<1x128xf32>
      %123 = tpu.matmul %122, %65, %cst_61 {dimension_numbers = #tpu.dot_dimension_numbers<[1], [0], [0], [1], [0, 0, 1, 1], [], []>} : vector<1x256xbf16>, vector<256x128xbf16>, vector<1x128xf32> -> vector<1x128xf32>
      %124 = arith.addf %123, %67 : vector<1x128xf32>
      %125 = arith.addf %96, %124 : vector<1x128xf32>
      %c0_62 = arith.constant 0 : index
      %c0_63 = arith.constant 0 : index
      %c0_64 = arith.constant 0 : index
      %126 = vector.load %arg15[%c0_62, %c0_63, %c0_64] : memref<1x1x128xf32, #tpu.memory_space<vmem>>, vector<1x1x128xf32>
      %127 = vector.shape_cast %126 : vector<1x1x128xf32> to vector<1x128xf32>
      %128 = vector.shape_cast %125 : vector<1x128xf32> to vector<1x1x128xf32>
      tpu.vector_store %arg15[%c0_62, %c0_63, %c0_64], %128 {strides = array<i32>} : memref<1x1x128xf32, #tpu.memory_space<vmem>>, vector<1x1x128xf32>,
    } else {
    }
    return
  }
  func.func @transform_0(%arg0: i32, %arg1: i32) -> (i32, i32, i32) {
    %c0_i32 = arith.constant 0 : i32
    %c0_i32_0 = arith.constant 0 : i32
    %c0_i32_1 = arith.constant 0 : i32
    return %arg0, %c0_i32, %c0_i32_0 : i32, i32, i32
  }
  func.func @transform_1(%arg0: i32, %arg1: i32) -> (i32, i32, i32) {
    %c0_i32 = arith.constant 0 : i32
    %c0_i32_0 = arith.constant 0 : i32
    %c0_i32_1 = arith.constant 0 : i32
    return %arg1, %c0_i32, %c0_i32_0 : i32, i32, i32
  }
  func.func @transform_2(%arg0: i32, %arg1: i32) -> (i32, i32, i32) {
    %c0_i32 = arith.constant 0 : i32
    %c0_i32_0 = arith.constant 0 : i32
    %c0_i32_1 = arith.constant 0 : i32
    return %arg1, %c0_i32, %c0_i32_0 : i32, i32, i32
  }
  func.func @transform_3(%arg0: i32, %arg1: i32) -> (i32, i32, i32) {
    %c0_i32 = arith.constant 0 : i32
    %c0_i32_0 = arith.constant 0 : i32
    %c0_i32_1 = arith.constant 0 : i32
    return %arg1, %c0_i32, %c0_i32_0 : i32, i32, i32
  }
  func.func @transform_4(%arg0: i32, %arg1: i32) -> (i32, i32, i32) {
    %c0_i32 = arith.constant 0 : i32
    %c0_i32_0 = arith.constant 0 : i32
    %c0_i32_1 = arith.constant 0 : i32
    return %arg1, %c0_i32, %c0_i32_0 : i32, i32, i32
  }
  func.func @transform_5(%arg0: i32, %arg1: i32) -> (i32, i32, i32) {
    %c0_i32 = arith.constant 0 : i32
    %c0_i32_0 = arith.constant 0 : i32
    %c0_i32_1 = arith.constant 0 : i32
    return %arg1, %c0_i32, %c0_i32_0 : i32, i32, i32
  }
  func.func @transform_6(%arg0: i32, %arg1: i32) -> (i32, i32, i32) {
    %c0_i32 = arith.constant 0 : i32
    %c0_i32_0 = arith.constant 0 : i32
    %c0_i32_1 = arith.constant 0 : i32
    return %arg1, %c0_i32, %c0_i32_0 : i32, i32, i32
  }
  func.func @transform_7(%arg0: i32, %arg1: i32) -> (i32, i32, i32) {
    %c0_i32 = arith.constant 0 : i32
    %c0_i32_0 = arith.constant 0 : i32
    %c0_i32_1 = arith.constant 0 : i32
    return %arg1, %c0_i32, %c0_i32_0 : i32, i32, i32
  }
  func.func @transform_8(%arg0: i32, %arg1: i32) -> (i32, i32, i32) {
    %c0_i32 = arith.constant 0 : i32
    %c0_i32_0 = arith.constant 0 : i32
    %c0_i32_1 = arith.constant 0 : i32
    return %arg1, %c0_i32, %c0_i32_0 : i32, i32, i32
  }
  func.func @transform_9(%arg0: i32, %arg1: i32) -> (i32, i32, i32) {
    %c0_i32 = arith.constant 0 : i32
    %c0_i32_0 = arith.constant 0 : i32
    %c0_i32_1 = arith.constant 0 : i32
    return %arg1, %c0_i32, %c0_i32_0 : i32, i32, i32
  }
  func.func @transform_10(%arg0: i32, %arg1: i32) -> (i32, i32, i32) {
    %c0_i32 = arith.constant 0 : i32
    %c0_i32_0 = arith.constant 0 : i32
    %c0_i32_1 = arith.constant 0 : i32
    return %arg1, %c0_i32, %c0_i32_0 : i32, i32, i32
  }
  func.func @transform_11(%arg0: i32, %arg1: i32) -> (i32, i32, i32) {
    %c0_i32 = arith.constant 0 : i32
    %c0_i32_0 = arith.constant 0 : i32
    %c0_i32_1 = arith.constant 0 : i32
    return %arg1, %c0_i32, %c0_i32_0 : i32, i32, i32
  }
  func.func @transform_12(%arg0: i32, %arg1: i32) -> (i32, i32, i32) {
    %c0_i32 = arith.constant 0 : i32
    %c0_i32_0 = arith.constant 0 : i32
    %c0_i32_1 = arith.constant 0 : i32
    return %arg1, %c0_i32, %c0_i32_0 : i32, i32, i32
  }
  func.func @transform_13(%arg0: i32, %arg1: i32) -> (i32, i32, i32) {
    %c0_i32 = arith.constant 0 : i32
    %c0_i32_0 = arith.constant 0 : i32
    %c0_i32_1 = arith.constant 0 : i32
    return %arg0, %c0_i32, %c0_i32_0 : i32, i32, i32
  }
}

</mosaic_0001>

<bundles_post_ra>
// kernel: tpu_custom_call.1
= control target key start
LH: loop header
LB: loop body
LE: loop exit
PB: predicated region body
PF: predicated region fallthrough
CT: control target
= control target key end

     0   :  { %s6104_s0 = inlined_call_operand.hbm [shape: f32[2,8,128], index: 0, kind: input, shape index: {}]   ;;  %s6105_s1 = inlined_call_operand.hbm [shape: f32[2,1,128], index: 1, kind: input, shape index: {}]   ;;  %s6106_s2 = inlined_call_operand.hbm [shape: f32[2,1,128], index: 2, kind: input, shape index: {}]   ;;  %s6107_s3 = inlined_call_operand.hbm [shape: bf16[2,128,384], index: 3, kind: input, shape index: {}]   ;;  %s6108_s4 = inlined_call_operand.vmem [shape: f32[2,1,384], index: 4, kind: input, shape index: {}]   ;;  %s6109_s5 = inlined_call_operand.hbm [shape: bf16[2,128,128], index: 5, kind: input, shape index: {}]   ;;  %s6110_s6 = inlined_call_operand.vmem [shape: f32[2,1,128], index: 6, kind: input, shape index: {}]   ;;  %s6111_s7 = inlined_call_operand.vmem [shape: f32[2,1,128], index: 7, kind: input, shape index: {}]   ;;  %s6112_s8 = inlined_call_operand.vmem [shape: f32[2,1,128], index: 8, kind: input, shape index: {}]   ;;  %s6113_s9 = inlined_call_operand.hbm [shape: bf16[2,128,256], index: 9, kind: input, shape index: {}]   ;;  %s6114_s10 = inlined_call_operand.vmem [shape: f32[2,1,256], index: 10, kind: input, shape index: {}]   ;;  %s6115_s11 = inlined_call_operand.hbm [shape: bf16[2,256,128], index: 11, kind: input, shape index: {}]   ;;  %s6116_s12 = inlined_call_operand.vmem [shape: f32[2,1,128], index: 12, kind: input, shape index: {}]   ;;  %s6117_s13 = inlined_call_operand.hbm [shape: f32[2,1,128], index: 13, kind: output, shape index: {}]  }
   0x1   :  { %6165 = sst [smem:[#allocation84_spill]] %s6104_s0 }
   0x2   :  { %6166 = sst [smem:[#allocation85_spill]] %s6105_s1 }
   0x3   :  { %6167 = sst [smem:[#allocation86_spill]] %s6106_s2 }
   0x4   :  { %6168 = sst [smem:[#allocation87_spill]] %s6107_s3 }
   0x5   :  { %6169 = sst [smem:[#allocation88_spill]] %s6108_s4 }
   0x6   :  { %6170 = sst [smem:[#allocation89_spill]] %s6109_s5 }
   0x7   :  { %6171 = sst [smem:[#allocation90_spill]] %s6110_s6 }
   0x8   :  { %6172 = sst [smem:[#allocation91_spill]] %s6111_s7 }
   0x9   :  { %6173 = sst [smem:[#allocation92_spill]] %s6112_s8 }
   0xa   :  { %6174 = sst [smem:[#allocation93_spill]] %s6113_s9 }
   0xb   :  { %6175 = sst [smem:[#allocation94_spill]] %s6114_s10 }
   0xc   :  { %6176 = sst [smem:[#allocation95_spill]] %s6115_s11 }
   0xd   :  { %6177 = sst [smem:[#allocation96_spill]] %s6116_s12 }
   0xe   :  { %6178 = sst [smem:[#allocation97_spill]] %s6117_s13 }
   0xf   :  { %18 = vsyncpa [#allocation4], 0 }
  0x10   :  { %20 = vsyncpa [#allocation4 + $0x1], 0 }
  0x11   :  { %21 = vsyncpa [#allocation7], 0 }
  0x12   :  { %23 = vsyncpa [#allocation7 + $0x1], 0 }
  0x13   :  { %24 = vsyncpa [#allocation10], 0 }
  0x14   :  { %26 = vsyncpa [#allocation10 + $0x1], 0 }
  0x15   :  { %27 = vsyncpa [#allocation13], 0 }
  0x16   :  { %29 = vsyncpa [#allocation13 + $0x1], 0 }
  0x17   :  { %30 = vsyncpa [#allocation5], 0 }
  0x18   :  { %32 = vsyncpa [#allocation5 + $0x1], 0  ;;  %s4825_s25 = smov 0   ;;  %s4827_s26 = smov 0  }
  0x19   :  { %s4829_s27 = smov 0   ;;  %s4831_s28 = smov 0  }
  0x1a   :  { %s4833_s29 = smov 0   ;;  %s4835_s30 = smov 0  }
  0x1b   :  { %s4837_s14 = smov 0   ;;  %s4839_s15 = smov 0  }
  0x1c   :  { %s4841_s16 = smov 0   ;;  %s4843_s17 = smov 0  }
  0x1d   :  { %s4845_s18 = smov 0  }
  0x1e LB: > { %6179 = sst [smem:[#allocation21_spill]] %s4683_s26  ;;  %p6122_p0 = scmp.eq.s32.totalorder %s4719_s18, 0  ;;  %s4719_s18 = sphi %s4845_s18, %s38_s18   ;;  %s4715_s17 = sphi %s4843_s17, %s6388_s17   ;;  %s4711_s16 = sphi %s4841_s16, %s6387_s16   ;;  %s4707_s15 = sphi %s4839_s15, %s6386_s15   ;;  %s4703_s14 = sphi %s4837_s14, %s6385_s14   ;;  %s4699_s30 = sphi %s4835_s30, %s6384_s30   ;;  %s4695_s29 = sphi %s4833_s29, %s6383_s29   ;;  %s4691_s28 = sphi %s4831_s28, %s6382_s28   ;;  %s4687_s27 = sphi %s4829_s27, %s6381_s27   ;;  %s4683_s26 = sphi %s4827_s26, %s6380_s26   ;;  %s4679_s25 = sphi %s4825_s25, %s6379_s25  }
  0x1f   : > { %6180 = sst [smem:[#allocation22_spill]] %s4687_s27  ;;  %p90_p1 = scmp.ne.s32.totalorder %s4687_s27, %s4683_s26 }
  0x20   : > { %6181 = sst [smem:[#allocation23_spill]] %s4691_s28  ;;  %p6121_p3 = scmp.lt.s32.totalorder %s4719_s18, 4 }
  0x21   : > { %6182 = sst [smem:[#allocation24_spill]] %s4695_s29  ;;  %p92_p4 = por %p90_p1, %p6122_p0 }
  0x22   : > { %6183 = sst [smem:[#allocation25_spill]] %s4699_s30  ;;  %s4890_s20 = sand.u32 1, %s4719_s18  }
  0x23   : > { %6184 = sst [smem:[#allocation26_spill]] %s4703_s14  ;;  %s4893_s21 = sand.u32 1, %s4687_s27  }
  0x24   : > { %6185 = sst [smem:[#allocation27_spill]] %s4707_s15  ;;  %s3727_s22 = sshll.u32 %s4711_s16, 4 }
  0x25   : > { %6186 = sst [smem:[#allocation28_spill]] %s4711_s16  ;;  %s6189_s1 = sld [smem:[#allocation85_spill]] }
  0x26   : > { %6187 = sst [smem:[#allocation29_spill]] %s4715_s17  ;;  %s453_s19 = scalar_lea.vmem [#allocation6], %s4893_s21 }
  0x27   : > { %6188 = sst [smem:[#allocation30_spill]] %s4719_s18  ;;  %s460_s15 = sshll.u32 %s453_s19, 4  ;;  %s4902_s15 = int_to_ptr.vmem [resolvable:$true] %s460_s15 }
  0x28   : > { %p4906_p5 = pnand %p6121_p3, %p92_p4  ;;  %s6191_s2 = sld [smem:[#allocation86_spill]] }
  0x29   : > { %s6123_s24 = scalar_lea.sflag [#allocation7], %s4890_s20 }
  0x2a   : > { %s6190_s12 = scalar_select %p4906_p5, 1, 0 }
  0x2b   : > { %s4899_s13 = scalar_lea.hbm %s6189_s1, %s3727_s22  ;;  %p4920_p7 = pneg %p4906_p5 }
  0x2c   : > { %s4375_s8 = scalar_lea.hbm %s4899_s13, 16  ;;  %s4380_s14 = scalar_lea.hbm %s6189_s1, 32 }
  0x2d   : > { %p4376_p6 = scmp.ne.s32.totalorder %s4899_s13, %s4375_s8  ;;  %p4381_p10 = scmp.lt.u32.totalorder %s4899_s13, %s6189_s1 }
  0x2e   : > { %s4913_s23 = scalar_lea.hbm %s6191_s2, %s3727_s22  ;;  %p4382_p11 = scmp.lt.u32.totalorder %s4380_s14, %s4375_s8 }
  0x2f   : > { %p4378_p8 = pnand %p4920_p7, %p4376_p6  ;;  %p4384_p13 = scmp.lt.u32.totalorder %s4375_s8, %s4899_s13 }
  0x30   : > { %p4383_p12 = por %p4382_p11, %p4381_p10 }
  0x31   : > { %p4379_p9 = pneg %p4378_p8 }
  0x32   : > { %p4385_p1 = por %p4384_p13, %p4383_p12 }
  0x34   : > { %p4386_p4 = pnand %p4385_p1, %p4379_p9 }
  0x36   : > { %4389 = shalt.err (!%p4386_p4)
}
  0x37   : > { %s4390_s22 = scalar_lea.vmem %s4902_s15, 16  ;;  %s4721_s6 = smov [#allocation6]  }
  0x38   : > { %p4391_p6 = scmp.ne.s32.totalorder %s4902_s15, %s4390_s22  ;;  %s4395_s19 = sshll.u32 %s4721_s6, 4  ;;  %s4396_s19 = int_to_ptr.vmem [resolvable:$false] %s4395_s19 }
  0x39   : > { %s4397_s4 = scalar_lea.vmem %s4396_s19, 32  ;;  %p4398_p2 = scmp.lt.s32.totalorder %s4902_s15, %s4396_s19 }
  0x3a   : > { %p4393_p8 = pnand %p4391_p6, %p4920_p7  ;;  %p4399_p0 = scmp.lt.s32.totalorder %s4397_s4, %s4390_s22 }
  0x3c   : > { %p4394_p3 = pneg %p4393_p8  ;;  %p4400_p10 = por %p4399_p0, %p4398_p2 }
  0x3e   : > { %p4401_p11 = pnand %p4400_p10, %p4394_p3 }
  0x40   : > { %4404 = shalt.err (!%p4401_p11)
}
  0x41   : > { %4169 = dma.hbm_to_vmem [thread:$0]  (!%p4906_p5), %s4899_s13, 16, %s4902_s15, %s6123_s24  }
  0x42   : > { %p3739_p9 = scmp.ge.s32.totalorder %s4719_s18, 1  ;;  %p604_p12 = scmp.lt.s32.totalorder %s4719_s18, 5 }
  0x43   : > { %s4143_s8 = smul.u32 192, %s4893_s21  ;;  %s6195_s3 = sld [smem:[#allocation87_spill]] }
  0x44   : > { %p4948_p0 = pnand %p3739_p9, %p604_p12  ;;  %s4144_s10 = smul.u32 3072, %s4711_s16 }
  0x45   : > { %s488_s4 = scalar_lea.vmem [#allocation9], %s4143_s8  ;;  %s3733_s13 = sshll.u32 %s4893_s21, 7 }
  0x46   : > { %s6193_s14 = scalar_select %p4948_p0, 1, 0 }
  0x47   : > { %s495_s1 = sshll.u32 %s488_s4, 4  ;;  %s6127_s15 = scalar_lea.sflag [#allocation10], %s4890_s20  ;;  %s4958_s1 = int_to_ptr.vmem [resolvable:$true] %s495_s1 }
  0x48   : > { %6194 = sst [smem:[#allocation31_spill]] %s6193_s14 }
  0x49   : > { %s4956_s19 = scalar_lea.hbm %s6195_s3, %s4144_s10  ;;  %s4410_s10 = scalar_lea.hbm %s6195_s3, 6144 }
  0x4a   : > { %s4405_s24 = scalar_lea.hbm %s4956_s19, 3072  ;;  %p4411_p1 = scmp.lt.u32.totalorder %s4956_s19, %s6195_s3 }
  0x4b   : > { %p4406_p2 = scmp.ne.s32.totalorder %s4956_s19, %s4405_s24  ;;  %p4412_p4 = scmp.lt.u32.totalorder %s4410_s10, %s4405_s24 }
  0x4c   : > { %p4414_p8 = scmp.lt.u32.totalorder %s4405_s24, %s4956_s19 }
  0x4d   : > { %p4408_p3 = pnand %p4406_p2, %p4920_p7  ;;  %p4413_p6 = por %p4412_p4, %p4411_p1 }
  0x4f   : > { %p4409_p13 = pneg %p4408_p3  ;;  %p4415_p10 = por %p4414_p8, %p4413_p6 }
  0x51   : > { %p4416_p11 = pnand %p4415_p10, %p4409_p13 }
  0x53   : > { %4419 = shalt.err (!%p4416_p11)
}
  0x54   : > { %s4420_s8 = scalar_lea.vmem %s4958_s1, 3072  ;;  %s4722_s5 = smov [#allocation9]  }
  0x55   : > { %p4421_p9 = scmp.ne.s32.totalorder %s4958_s1, %s4420_s8  ;;  %s4425_s14 = sshll.u32 %s4722_s5, 4  ;;  %s4426_s14 = int_to_ptr.vmem [resolvable:$false] %s4425_s14 }
  0x56   : > { %s4427_s4 = scalar_lea.vmem %s4426_s14, 6144  ;;  %p4428_p3 = scmp.lt.s32.totalorder %s4958_s1, %s4426_s14 }
  0x57   : > { %p4423_p12 = pnand %p4421_p9, %p4920_p7  ;;  %p4429_p0 = scmp.lt.s32.totalorder %s4427_s4, %s4420_s8 }
  0x59   : > { %p4424_p2 = pneg %p4423_p12  ;;  %p4430_p1 = por %p4429_p0, %p4428_p3 }
  0x5b   : > { %p4431_p4 = pnand %p4430_p1, %p4424_p2 }
  0x5d   : > { %4434 = shalt.err (!%p4431_p4)
}
  0x5e   : > { %s4723_s24 = smov 192   ;;  %s4724_s10 = smov 12  }
  0x5f   : > { %4175 = dma.hbm_to_vmem [thread:$0]  (!%p4906_p5), %s4956_s19, 3072, %s4958_s1, %s6127_s15, %s4723_s24, %s4723_s24, %s4724_s10  }
  0x60   : > { %s3882_s22 = sshll.u32 %s4711_s16, 11  ;;  %s6196_s9 = sld [smem:[#allocation93_spill]] }
  0x61   : > { %s555_s14 = scalar_lea.vmem [#allocation12], %s3733_s13  ;;  %s6128_s3 = scalar_lea.sflag [#allocation13], %s4890_s20 }
  0x62   : > { %s562_s4 = sshll.u32 %s555_s14, 4  ;;  %s4995_s4 = int_to_ptr.vmem [resolvable:$true] %s562_s4 }
  0x66   : > { %s4991_s5 = scalar_lea.hbm %s6196_s9, %s3882_s22  ;;  %s4440_s24 = scalar_lea.hbm %s6196_s9, 4096 }
  0x67   : > { %s4435_s2 = scalar_lea.hbm %s4991_s5, 2048  ;;  %p4441_p8 = scmp.lt.u32.totalorder %s4991_s5, %s6196_s9 }
  0x68   : > { %p4436_p0 = scmp.ne.s32.totalorder %s4991_s5, %s4435_s2  ;;  %p4442_p10 = scmp.lt.u32.totalorder %s4440_s24, %s4435_s2 }
  0x69   : > { %p4444_p9 = scmp.lt.u32.totalorder %s4435_s2, %s4991_s5 }
  0x6a   : > { %p4438_p13 = pnand %p4436_p0, %p4920_p7  ;;  %p4443_p11 = por %p4442_p10, %p4441_p8 }
  0x6c   : > { %p4439_p6 = pneg %p4438_p13  ;;  %p4445_p12 = por %p4444_p9, %p4443_p11 }
  0x6e   : > { %p4446_p2 = pnand %p4445_p12, %p4439_p6 }
  0x70   : > { %4449 = shalt.err (!%p4446_p2)
}
  0x71   : > { %s4450_s8 = scalar_lea.vmem %s4995_s4, 2048  ;;  %s4725_s14 = smov [#allocation12]  }
  0x72   : > { %p4451_p3 = scmp.ne.s32.totalorder %s4995_s4, %s4450_s8  ;;  %s4455_s1 = sshll.u32 %s4725_s14, 4  ;;  %s4456_s1 = int_to_ptr.vmem [resolvable:$false] %s4455_s1 }
  0x73   : > { %s4457_s19 = scalar_lea.vmem %s4456_s1, 4096  ;;  %p4458_p0 = scmp.lt.s32.totalorder %s4995_s4, %s4456_s1 }
  0x74   : > { %p4453_p1 = pnand %p4451_p3, %p4920_p7  ;;  %p4459_p13 = scmp.lt.s32.totalorder %s4457_s19, %s4450_s8 }
  0x76   : > { %p4454_p4 = pneg %p4453_p1  ;;  %p4460_p8 = por %p4459_p13, %p4458_p0 }
  0x78   : > { %p4461_p10 = pnand %p4460_p8, %p4454_p4 }
  0x7a   : > { %4464 = shalt.err (!%p4461_p10)
}
  0x7b   : > { %s4726_s2 = smov 128   ;;  %s4727_s24 = smov 8  }
  0x7c   : > { %4181 = dma.hbm_to_vmem [thread:$0]  (!%p4906_p5), %s4991_s5, 2048, %s4995_s4, %s6128_s3, %s4726_s2, %s4726_s2, %s4727_s24  }
  0x7d   : > { %s6197_s11 = sld [smem:[#allocation95_spill]]  ;;  %s583_s14 = scalar_lea.vmem [#allocation14], %s3733_s13 }
  0x7e   : > { %s590_s1 = sshll.u32 %s583_s14, 4  ;;  %s5033_s19 = sadd.s32 4294967295, %s4719_s18   ;;  %s5030_s1 = int_to_ptr.vmem [resolvable:$true] %s590_s1 }
  0x7f   : > { %6198 = sst [smem:[#allocation32_spill]] %s5033_s19  ;;  %s3722_s15 = sadd.s32 4294967294, %s4719_s18  }
  0x80   : > { %s47_s5 = sadd.s32 1, %s4711_s16  ;;  %s57_s4 = sadd.s32 1, %s4699_s30 }
  0x81   : > { %p48_p6 = scmp.ge.s32.totalorder %s47_s5, 2  ;;  %p64_p11 = scmp.ne.s32.totalorder %s4699_s30, %s4695_s29 }
  0x82   : > { %p6200_p9 = scmp.eq.s32.totalorder %s4719_s18, 0  ;;  %p70_p2 = scmp.ne.s32.totalorder %s4695_s29, %s4691_s28 }
  0x83   : > { %s5026_s8 = scalar_lea.hbm %s6197_s11, %s3882_s22  ;;  %s50_s22 = sadd.s32 1, %s4715_s17 }
  0x84   : > { %s6390_s5 = smov (%p48_p6, %s47_s5), 0  ;;  %s6392_s22 = smov (!%p48_p6, %s50_s22), %s4715_s17 }
  0x85   : > { %6199 = sst [smem:[#allocation33_spill]] %s6390_s5  ;;  %p5049_p12 = por %p6200_p9, %p64_p11 }
  0x86   : > { %p52_p3 = scmp.ge.s32.totalorder %s6392_s22, 2  ;;  %p71_p1 = scmp.eq.s32.totalorder %s5033_s19, 0 }
  0x87   : > { %s80_s2 = ssub.s32 %s4711_s16, %s6390_s5  ;;  %p406_p4 = scmp.eq.s32.totalorder %s5033_s19, 3 }
  0x88   : > { %s6394_s22 = smov (%p52_p3, %s6392_s22), 0  ;;  %p5064_p0 = por %p71_p1, %p70_p2 }
  0x89   : > { %6202 = sst [smem:[#allocation34_spill]] %s6394_s22  ;;  %p81_p13 = scmp.eq.s32.totalorder %s80_s2, 0 }
  0x8a   : > { %s6203_s24 = scalar_select %p5064_p0, 1, 0 }
  0x8b   : > { %s54_s10 = ssub.s32 %s4715_s17, %s6394_s22  ;;  %p6205_p8 = scmp.ne.s32.totalorder %s4683_s26, %s4679_s25 }
  0x8c   : > { %6204 = sst [smem:[#allocation35_spill]] %s6203_s24  ;;  %p55_p6 = scmp.eq.s32.totalorder %s54_s10, 0 }
  0x8d   : > { %p5073_p10 = por %p6205_p8, %p71_p1  ;;  %p5080_p9 = por %p406_p4, %p64_p11 }
  0x8e   : > { %s6210_s3 = sadd.s32 1, %s4687_s27  ;;  %p412_p3 = scmp.eq.s32.totalorder %s3722_s15, 3 }
  0x8f   : > { %s6206_s6 = scalar_select %p5073_p10, 1, 0 }
  0x90   : > { %s6208_s14 = scalar_select %p5080_p9, 1, 0 }
  0x91   : > { %6207 = sst [smem:[#allocation36_spill]] %s6206_s6  ;;  %s432_s22 = sand.u32 1, %s4699_s30  }
  0x92   : > { %6209 = sst [smem:[#allocation37_spill]] %s6208_s14  ;;  %s3725_s25 = sshll.u32 %s432_s22, 3 }
  0x93   : > { %s5087_s9 = scalar_select %p81_p13, %s4687_s27, %s6210_s3  }
  0x94   : > { %s5090_s2 = scalar_select %p55_p6, %s4699_s30, %s57_s4  }
  0x95   : > { %6211 = sst [smem:[#allocation38_spill]] %s5087_s9  ;;  %p5096_p1 = por %p412_p3, %p70_p2 }
  0x96   : > { %6212 = sst [smem:[#allocation39_spill]] %s5090_s2  ;;  %s3726_s10 = sshll.u32 %s4715_s17, 7 }
  0x97   : > { %s6213_s5 = scalar_select %p5096_p1, 1, 0 }
  0x98   : > { %s436_s6 = scalar_lea.vmem [#allocation3], %s3725_s25  ;;  %s6215_s0 = sld [smem:[#allocation84_spill]] }
  0x99   : > { %6214 = sst [smem:[#allocation40_spill]] %s6213_s5  ;;  %s443_s26 = sshll.u32 %s436_s6, 4  ;;  %s5106_s26 = int_to_ptr.vmem [resolvable:$true] %s443_s26 }
  0x9a   : > { %p6216_p11 = scmp.lt.s32.totalorder %s4719_s18, 4  ;;  %s470_s15 = scalar_lea.vmem [#allocation8], %s4893_s21 }
  0x9b   : > { %s477_s4 = sshll.u32 %s470_s15, 4  ;;  %s3730_s6 = sshll.u32 %s4893_s21, 6  ;;  %s5118_s4 = int_to_ptr.vmem [resolvable:$true] %s477_s4 }
  0x9c   : > { %p5112_p2 = pnand %p6216_p11, %p5049_p12  ;;  %s433_s19 = scalar_lea.sflag [#allocation4], %s432_s22 }
  0x9e   : > { %s5104_s14 = scalar_lea.hbm %s6215_s0, %s3726_s10  ;;  %p4467_p13 = pneg %p5112_p2 }
  0x9f   : > { %s4465_s24 = scalar_lea.hbm %s5104_s14, 128  ;;  %s4470_s10 = scalar_lea.hbm %s6215_s0, 256 }
  0xa0   : > { %p4466_p4 = scmp.ne.s32.totalorder %s5104_s14, %s4465_s24  ;;  %p4471_p12 = scmp.lt.u32.totalorder %s5104_s14, %s6215_s0 }
  0xa1   : > { %p4472_p3 = scmp.lt.u32.totalorder %s4470_s10, %s4465_s24  ;;  %p4474_p1 = scmp.lt.u32.totalorder %s4465_s24, %s5104_s14 }
  0xa2   : > { %p4468_p8 = pnand %p4467_p13, %p4466_p4 }
  0xa3   : > { %p4473_p11 = por %p4472_p3, %p4471_p12 }
  0xa4   : > { %p4469_p6 = pneg %p4468_p8 }
  0xa5   : > { %p4475_p9 = por %p4474_p1, %p4473_p11 }
  0xa7   : > { %p4476_p10 = pnand %p4475_p9, %p4469_p6 }
  0xa9   : > { %4479 = shalt.err (!%p4476_p10)
}
  0xaa   : > { %s4480_s22 = scalar_lea.vmem %s5106_s26, 128  ;;  %s4728_s15 = smov [#allocation3]  }
  0xab   : > { %p4481_p4 = scmp.ne.s32.totalorder %s5106_s26, %s4480_s22  ;;  %s4485_s13 = sshll.u32 %s4728_s15, 4  ;;  %s4486_s13 = int_to_ptr.vmem [resolvable:$false] %s4485_s13 }
  0xac   : > { %s4487_s17 = scalar_lea.vmem %s4486_s13, 256  ;;  %p4488_p5 = scmp.lt.s32.totalorder %s5106_s26, %s4486_s13 }
  0xad   : > { %p4483_p8 = pnand %p4481_p4, %p4467_p13  ;;  %p4489_p12 = scmp.lt.s32.totalorder %s4487_s17, %s4480_s22 }
  0xaf   : > { %p4484_p0 = pneg %p4483_p8  ;;  %p4490_p3 = por %p4489_p12, %p4488_p5 }
  0xb1   : > { %p4491_p1 = pnand %p4490_p3, %p4484_p0 }
  0xb3   : > { %4494 = shalt.err (!%p4491_p1)
}
  0xb4   : > { %4166 = dma.hbm_to_vmem [thread:$0]  (!%p5112_p2), %s5104_s14, 128, %s5106_s26, %s433_s19  }
  0xb5   : > { %s4495_s2 = scalar_lea.hbm %s4913_s23, 16  ;;  %s6218_s10 = sld [smem:[#allocation86_spill]] }
  0xb6   : > { %p4496_p10 = scmp.ne.s32.totalorder %s4913_s23, %s4495_s2  ;;  %p4504_p11 = scmp.lt.u32.totalorder %s4495_s2, %s4913_s23 }
  0xb8   : > { %p4498_p9 = pnand %p4496_p10, %p4920_p7 }
  0xba   : > { %p4499_p13 = pneg %p4498_p9 }
  0xbb   : > { %s4500_s22 = scalar_lea.hbm %s6218_s10, 32  ;;  %p4501_p5 = scmp.lt.u32.totalorder %s4913_s23, %s6218_s10 }
  0xbc   : > { %p4502_p0 = scmp.lt.u32.totalorder %s4500_s22, %s4495_s2 }
  0xbe   : > { %p4503_p6 = por %p4502_p0, %p4501_p5 }
  0xc0   : > { %p4505_p4 = por %p4504_p11, %p4503_p6 }
  0xc2   : > { %p4506_p8 = pnand %p4505_p4, %p4499_p13 }
  0xc4   : > { %4509 = shalt.err (!%p4506_p8)
}
  0xc5   : > { %s4510_s26 = scalar_lea.vmem %s5118_s4, 16  ;;  %s4729_s14 = smov [#allocation8]  }
  0xc6   : > { %p4511_p2 = scmp.ne.s32.totalorder %s5118_s4, %s4510_s26  ;;  %s4515_s3 = sshll.u32 %s4729_s14, 4  ;;  %s4516_s3 = int_to_ptr.vmem [resolvable:$false] %s4515_s3 }
  0xc7   : > { %s4517_s19 = scalar_lea.vmem %s4516_s3, 32  ;;  %p4518_p1 = scmp.lt.s32.totalorder %s5118_s4, %s4516_s3 }
  0xc8   : > { %p4513_p12 = pnand %p4511_p2, %p4920_p7  ;;  %p4519_p10 = scmp.lt.s32.totalorder %s4517_s19, %s4510_s26 }
  0xca   : > { %p4514_p3 = pneg %p4513_p12  ;;  %p4520_p9 = por %p4519_p10, %p4518_p1 }
  0xcc   : > { %p4521_p5 = pnand %p4520_p9, %p4514_p3 }
  0xce   : > { %4524 = shalt.err (!%p4521_p5)
}
  0xcf   : > { %p6219_p13 = scmp.ne.s32.totalorder %s6190_s12, 0  ;;  %s6220_s17 = scalar_lea.sflag [#allocation7], %s4890_s20 }
  0xd0   : > { %s3881_s2 = sshll.u32 %s4711_s16, 10  ;;  %s6221_s10 = sld [smem:[#allocation89_spill]] }
  0xd1   : > { %4172 = dma.hbm_to_vmem [thread:$0]  (!%p6219_p13), %s4913_s23, 16, %s5118_s4, %s6220_s17  }
  0xd2   : > { %s516_s15 = scalar_lea.vmem [#allocation11], %s3730_s6 }
  0xd3   : > { %s523_s13 = sshll.u32 %s516_s15, 4  ;;  %s5176_s13 = int_to_ptr.vmem [resolvable:$true] %s523_s13 }
  0xd6   : > { %s5172_s22 = scalar_lea.hbm %s6221_s10, %s3881_s2  ;;  %s4530_s14 = scalar_lea.hbm %s6221_s10, 2048 }
  0xd7   : > { %s4525_s26 = scalar_lea.hbm %s5172_s22, 1024  ;;  %p4531_p4 = scmp.lt.u32.totalorder %s5172_s22, %s6221_s10 }
  0xd8   : > { %p4526_p0 = scmp.ne.s32.totalorder %s5172_s22, %s4525_s26  ;;  %p4532_p8 = scmp.lt.u32.totalorder %s4530_s14, %s4525_s26 }
  0xd9   : > { %p4534_p12 = scmp.lt.u32.totalorder %s4525_s26, %s5172_s22 }
  0xda   : > { %p4528_p6 = pnand %p4526_p0, %p4920_p7  ;;  %p4533_p2 = por %p4532_p8, %p4531_p4 }
  0xdc   : > { %p4529_p11 = pneg %p4528_p6  ;;  %p4535_p3 = por %p4534_p12, %p4533_p2 }
  0xde   : > { %p4536_p1 = pnand %p4535_p3, %p4529_p11 }
  0xe0   : > { %4539 = shalt.err (!%p4536_p1)
}
  0xe1   : > { %s4540_s21 = scalar_lea.vmem %s5176_s13, 1024  ;;  %s4730_s6 = smov [#allocation11]  }
  0xe2   : > { %p4541_p10 = scmp.ne.s32.totalorder %s5176_s13, %s4540_s21  ;;  %s4545_s17 = sshll.u32 %s4730_s6, 4  ;;  %s4546_s17 = int_to_ptr.vmem [resolvable:$false] %s4545_s17 }
  0xe3   : > { %s4547_s2 = scalar_lea.vmem %s4546_s17, 2048  ;;  %p4548_p0 = scmp.lt.s32.totalorder %s5176_s13, %s4546_s17 }
  0xe4   : > { %p4543_p9 = pnand %p4541_p10, %p4920_p7  ;;  %p4549_p6 = scmp.lt.s32.totalorder %s4547_s2, %s4540_s21 }
  0xe6   : > { %p4544_p5 = pneg %p4543_p9  ;;  %p4550_p4 = por %p4549_p6, %p4548_p0 }
  0xe8   : > { %p4551_p8 = pnand %p4550_p4, %p4544_p5 }
  0xea   : > { %4554 = shalt.err (!%p4551_p8)
}
  0xeb   : > { %s4731_s24 = smov 64   ;;  %s4732_s25 = smov 4  }
  0xec   : > { %s6222_s15 = scalar_lea.sflag [#allocation10], %s4890_s20  ;;  %s4555_s26 = scalar_lea.hbm %s5026_s8, 2048 }
  0xed   : > { %4178 = dma.hbm_to_vmem [thread:$0]  (!%p6219_p13), %s5172_s22, 1024, %s5176_s13, %s6222_s15, %s4731_s24, %s4731_s24, %s4732_s25  }
  0xee   : > { %p4556_p11 = scmp.ne.s32.totalorder %s5026_s8, %s4555_s26  ;;  %s4560_s14 = scalar_lea.hbm %s6197_s11, 4096 }
  0xef   : > { %p4561_p3 = scmp.lt.u32.totalorder %s5026_s8, %s6197_s11  ;;  %p4562_p1 = scmp.lt.u32.totalorder %s4560_s14, %s4555_s26 }
  0xf0   : > { %p4558_p2 = pnand %p4556_p11, %p4920_p7  ;;  %p4564_p9 = scmp.lt.u32.totalorder %s4555_s26, %s5026_s8 }
  0xf1   : > { %p4563_p10 = por %p4562_p1, %p4561_p3 }
  0xf2   : > { %p4559_p12 = pneg %p4558_p2 }
  0xf3   : > { %p4565_p5 = por %p4564_p9, %p4563_p10 }
  0xf5   : > { %p4566_p0 = pnand %p4565_p5, %p4559_p12 }
  0xf7   : > { %4569 = shalt.err (!%p4566_p0)
}
  0xf8   : > { %s4570_s22 = scalar_lea.vmem %s5030_s1, 2048  ;;  %s4733_s13 = smov [#allocation14]  }
  0xf9   : > { %p4571_p6 = scmp.ne.s32.totalorder %s5030_s1, %s4570_s22  ;;  %s4575_s21 = sshll.u32 %s4733_s13, 4  ;;  %s4576_s21 = int_to_ptr.vmem [resolvable:$false] %s4575_s21 }
  0xfa   : > { %s4577_s6 = scalar_lea.vmem %s4576_s21, 4096  ;;  %p4578_p11 = scmp.lt.s32.totalorder %s5030_s1, %s4576_s21 }
  0xfb   : > { %p4573_p4 = pnand %p4571_p6, %p4920_p7  ;;  %p4579_p2 = scmp.lt.s32.totalorder %s4577_s6, %s4570_s22 }
  0xfd   : > { %p4574_p8 = pneg %p4573_p4  ;;  %p4580_p3 = por %p4579_p2, %p4578_p11 }
  0xff   : > { %p4581_p1 = pnand %p4580_p3, %p4574_p8 }
 0x101   : > { %4584 = shalt.err (!%p4581_p1)
}
 0x102   : > { %s6223_s17 = scalar_lea.sflag [#allocation13], %s4890_s20  ;;  %s6224_s7 = sld [smem:[#allocation31_spill]] }
 0x103   : > { %4184 = dma.hbm_to_vmem [thread:$0]  (!%p6219_p13), %s5026_s8, 2048, %s5030_s1, %s6223_s17, %s4731_s24, %s4731_s24, %s4732_s25  }
 0x108   : > { %p6225_p7 = scmp.ne.s32.totalorder %s6224_s7, 0 }
 0x10a   : > { %608 = sbr.rel (%p6225_p7) target bundleno = 4808 (0x12c8), region = 72 }
 0x111   : > { %s6226_s2 = sld [smem:[#allocation35_spill]]  ;;  %s5233_s15 = sand.u32 1, %s4695_s29  }
 0x112   : > { %s3740_s26 = sshll.u32 %s5233_s15, 3  ;;  %s611_s23 = scalar_lea.sflag [#allocation4], %s5233_s15 }
 0x113   : > { %s5237_s12 = scalar_lea.vmem [#allocation3], %s3740_s26 }
 0x117   : > { %p6227_p12 = scmp.ne.s32.totalorder %s6226_s2, 0 }
 0x119   : > { %4658 = dma.done.wait (%p6227_p12), %s611_s23, 128  }
 0x11a   : > { %4660 = vsyncadd (%p6227_p12), %s611_s23, 4294967168  ;;  %s6228_s20 = sld [smem:[#allocation32_spill]]  ;;  %s6229_s8 = sld [smem:[#allocation21_spill]] }
 0x11b   : > { %s6230_s1 = sld [smem:[#allocation36_spill]] }
 0x120   : > { %s619_s24 = sand.u32 1, %s6228_s20   ;;  %s5245_s25 = sand.u32 1, %s6229_s8  }
 0x121   : > { %s620_s4 = scalar_lea.sflag [#allocation7], %s619_s24  ;;  %p6231_p13 = scmp.ne.s32.totalorder %s6230_s1, 0 }
 0x123   : > { %4662 = dma.done.wait (%p6231_p13), %s620_s4, 32  }
 0x124   : > { %4664 = vsyncadd (%p6231_p13), %s620_s4, 4294967264  ;;  %s4145_s3 = smul.u32 192, %s5245_s25  ;;  %s636_s22 = scalar_lea.sflag [#allocation10], %s619_s24 }
 0x126   : > { %s5254_s13 = scalar_lea.vmem [#allocation9], %s4145_s3 }
 0x127   : > { %4666 = dma.done.wait (%p6231_p13), %s636_s22, 4096  }
 0x128   : > { %4668 = vsyncadd (%p6231_p13), %s636_s22, 4294963200  ;;  %s3741_s21 = sshll.u32 %s5245_s25, 6  ;;  %s3742_s6 = sshll.u32 %s5245_s25, 7 }
 0x129   : > { %s5262_s17 = scalar_lea.vmem [#allocation11], %s3741_s21  ;;  %s654_s7 = scalar_lea.sflag [#allocation13], %s619_s24 }
 0x12a   : > { %s5264_s2 = scalar_lea.vmem [#allocation12], %s3742_s6 }
 0x12b   : > { %4670 = dma.done.wait (%p6231_p13), %s654_s7, 4096  }
 0x12c   : > { %4672 = vsyncadd (%p6231_p13), %s654_s7, 4294963200  ;;  %s6232_s26 = sld [smem:[#allocation26_spill]]  ;;  %s6233_s4 = sld [smem:[#allocation90_spill]] }
 0x12d   : > { %s6234_s21 = sld [smem:[#allocation91_spill]]  ;;  %s6235_s0 = sld [smem:[#allocation92_spill]] }
 0x12e   : > { %s6236_s30 = sld [smem:[#allocation88_spill]]  ;;  %s6237_s28 = sld [smem:[#allocation94_spill]] }
 0x12f   : > { %s5303_s22 = scalar_lea.vmem [#allocation14], %s3742_s6 }
 0x132   : > { %p756_p10 = scmp.lt.s32.totalorder %s6232_s26, 1  ;;  %p777_p9 = scmp.eq.s32.totalorder %s6232_s26, 0 }
 0x133   : > { %p3745_p5 = scmp.ne.s32.totalorder %s6232_s26, 0 }
 0x134   : > { %s5273_s23 = scalar_select %p756_p10, %s6232_s26, 1 }
 0x135   : > { %v781_v0 = vld [vmem:[%s5237_s12] sm:$0xff] (!%p3745_p5) }
 0x136   : > { %s4146_s20 = smul.u32 3, %s5273_s23  ;;  %s762_s1 = scalar_lea.vmem %s6233_s4, %s5273_s23  ;;  %782 = vst [vmem:[#allocation2] sm:$0xff] (!%p3745_p5), %v781_v0 }
 0x137   : > { %s765_s7 = scalar_lea.vmem %s6234_s21, %s5273_s23  ;;  %s768_s10 = scalar_lea.vmem %s6235_s0, %s5273_s23 }
 0x138   : > { %s5291_s29 = scalar_lea.vmem %s6236_s30, %s4146_s20  ;;  %s3744_s9 = sshll.u32 %s5273_s23, 1 }
 0x139   : > { %s5297_s18 = scalar_lea.vmem %s6237_s28, %s3744_s9  ;;  %s6238_s4 = sld [smem:[#allocation96_spill]] }
 0x13a   : > { %s755_s21 = scalar_lea.vmem [#allocation15], %s5233_s15  ;;  %780 = sbr.rel (%p3745_p5) target bundleno = 321 (0x141), region = 104 }
 0x13f   : > { %s775_s3 = scalar_lea.vmem %s6238_s4, %s5273_s23 }
 0x141 PF: > { %v5308_v1 = vld [vmem:[#allocation2] sm:$0xff]  ;;  %v4307_v3 = vld [vmem:[%s5254_s13] ss:$12 sps:$4 sm:$0xff]   ;;  %v4734_v4 = vmov 0.0   ;;  %v4315_v14 = vld [vmem:[%s5254_s13 + $0x30] ss:$12 sps:$4 sm:$0xff]   ;;  %v849_v43 = vlaneseq }
 0x142   : > { %787 = vadd.xlane.f32.xlu0 %v5308_v1  ;;  %v4305_v2 = vld [vmem:[%s5254_s13 + $0x4] ss:$12 sps:$4 sm:$0xff]   ;;  %3987 = vmatprep.subr.bf16.mxu1 %v4734_v4  ;;  %v4308_v5 = vld [vmem:[%s5254_s13 + $0x8] ss:$12 sps:$4 sm:$0xff]   ;;  %v4312_v8 = vld [vmem:[%s5254_s13 + $0x20] ss:$12 sps:$4 sm:$0xff]  }
 0x143   : > { %v4309_v6 = vld [vmem:[%s5254_s13 + $0x1c] ss:$12 sps:$4 sm:$0xff]   ;;  %992 = vmatprep.subr.bf16.mxu0 %v4305_v2  ;;  %3988 = vmatpush3.bf16.msra.mxu1 %v4308_v5  ;;  %v4311_v7 = vld [vmem:[%s5254_s13 + $0x18] ss:$12 sps:$4 sm:$0xff]   ;;  %v4313_v9 = vld [vmem:[%s5254_s13 + $0x34] ss:$12 sps:$4 sm:$0xff]  }
 0x144   : > { %993 = vmatpush1.bf16.msra.mxu0 %v4307_v3  ;;  %3989 = vmatprep.subr.bf16.mxu1 %v4734_v4  ;;  %v4316_v15 = vld [vmem:[%s5254_s13 + $0x38] ss:$12 sps:$4 sm:$0xff]   ;;  %v4319_v17 = vld [vmem:[%s5254_s13 + $0x48] ss:$12 sps:$4 sm:$0xff]   ;;  %v4320_v18 = vld [vmem:[%s5254_s13 + $0x50] ss:$12 sps:$4 sm:$0xff]  }
 0x145   : > { %994 = vmatprep.subr.bf16.mxu0 %v4309_v6  ;;  %v4317_v16 = vld [vmem:[%s5254_s13 + $0x4c] ss:$12 sps:$4 sm:$0xff]   ;;  %v4321_v19 = vld [vmem:[%s5254_s13 + $0x64] ss:$12 sps:$4 sm:$0xff]   ;;  %v4324_v21 = vld [vmem:[%s5254_s13 + $0x68] ss:$12 sps:$4 sm:$0xff]  }
 0x146   : > { %v4323_v20 = vld [vmem:[%s5254_s13 + $0x60] ss:$12 sps:$4 sm:$0xff]   ;;  %v4325_v22 = vld [vmem:[%s5254_s13 + $0x7c] ss:$12 sps:$4 sm:$0xff]   ;;  %v4327_v23 = vld [vmem:[%s5254_s13 + $0x78] ss:$12 sps:$4 sm:$0xff]  }
 0x147   : > { %3990 = vmatpush3.bf16.msra.mxu1 %v4312_v8  ;;  %v4328_v24 = vld [vmem:[%s5254_s13 + $0x80] ss:$12 sps:$4 sm:$0xff]   ;;  %v4735_v26 = vmov 0   ;;  %vm4736_vm0 = vmmov 0   ;;  %s6239_s0 = sld [smem:[#allocation26_spill]]  ;;  %s6240_s11 = scalar_lea.vmem [#allocation6], %s5245_s25 }
 0x148   : > { %995 = vmatpush1.bf16.msra.mxu0 %v4311_v7  ;;  %3991 = vmatprep.subr.bf16.mxu1 %v4734_v4  ;;  %v4329_v25 = vld [vmem:[%s5254_s13 + $0x94] ss:$12 sps:$4 sm:$0xff]   ;;  %v4331_v27 = vld [vmem:[%s5254_s13 + $0x90] ss:$12 sps:$4 sm:$0xff]   ;;  %v4332_v28 = vld [vmem:[%s5254_s13 + $0x98] ss:$12 sps:$4 sm:$0xff]  }
 0x149   : > { %996 = vmatprep.subr.bf16.mxu0 %v4313_v9  ;;  %1024 = vmatprep.mubr.bf16.mxu0 %v4735_v26  ;;  %v4333_v29 = vld [vmem:[%s5254_s13 + $0xac] ss:$12 sps:$4 sm:$0xff]   ;;  %v4335_v30 = vld [vmem:[%s5254_s13 + $0xa8] ss:$12 sps:$4 sm:$0xff]   ;;  %v4336_v31 = vld [vmem:[%s5254_s13 + $0xb0] ss:$12 sps:$4 sm:$0xff]  }
 0x14a   : > { %4003 = vmatprep.mubr.msk.bf16.mxu1 %vm4736_vm0, %v4734_v4  ;;  %s784_s9 = scalar_select %p777_p9, 0.0, 1e-05  ;;  %v3746_v37 = vld [vmem:[%s6240_s11] ss:$0 sm:$0xff]  ;;  %v5342_v44 = vshrl.u32 %v849_v43, 7 }
 0x14b   : > { %3992 = vmatpush3.bf16.msra.mxu1 %v4316_v15  ;;  %s6241_s27 = scalar_lea.vmem [#allocation8], %s5245_s25  ;;  %v847_v46 = vld [vmem:[%s5291_s29] sm:$0x7]  ;;  %s4737_s28 = smov 32   ;;  %v5370_v63 = vld [vmem:[%s5262_s17] sm:$0xf] }
 0x14c   : > { %997 = vmatpush1.bf16.msra.mxu0 %v4315_v14  ;;  %3993 = vmatprep.subr.bf16.mxu1 %v4734_v4  ;;  %v796_v32 = vstv %s784_s9  ;;  %v3747_v39 = vld [vmem:[%s6241_s27] ss:$0 sm:$0xff]  ;;  %v5345_v45 = vsub.s32 0, %v5342_v44  ;;  %v859_v51 = vsub.s32 2, %v5342_v44  ;;  %s4738_s30 = smov 96   ;;  %s4739_s29 = smov 64  }
 0x14d   : > { %998 = vmatprep.subr.bf16.mxu0 %v4317_v16  ;;  %v5358_v60 = vsub.s32 1, %v5342_v44  ;;  %v5373_v0 = vld [vmem:[%s5262_s17 + $0x4] sm:$0xf]  ;;  %v5376_v2 = vld [vmem:[%s5262_s17 + $0x8] sm:$0xf]  ;;  %v5460_v26 = vld [vmem:[%s5264_s2 + $0x38] sm:$0xff] }
 0x14e   : > { %v852_v47 = vrot.slane %v847_v46, %v5345_v45  ;;  %v860_v58 = vrot.slane %v847_v46, %v859_v51  ;;  %v5379_v3 = vld [vmem:[%s5262_s17 + $0xc] sm:$0xf]  ;;  %v5385_v5 = vld [vmem:[%s5262_s17 + $0x14] sm:$0xf]  ;;  %v5388_v6 = vld [vmem:[%s5262_s17 + $0x18] sm:$0xf] }
 0x14f   : > { %3994 = vmatpush3.bf16.msra.mxu1 %v4320_v18  ;;  %6242 = vst [vmem:[#allocation41_spill] sm:$0xff] %v5358_v60  ;;  %v856_v61 = vrot.slane %v847_v46, %v5358_v60  ;;  %v5391_v7 = vld [vmem:[%s5262_s17 + $0x1c] sm:$0xf]  ;;  %v5394_v8 = vld [vmem:[%s5262_s17 + $0x20] sm:$0xf]  ;;  %p3778_p0 = scmp.ge.s32.totalorder %s6239_s0, 1 }
 0x150   : > { %999 = vmatpush1.bf16.msra.mxu0 %v4319_v17  ;;  %3995 = vmatprep.subr.bf16.mxu1 %v4734_v4  ;;  %v5397_v9 = vld [vmem:[%s5262_s17 + $0x24] sm:$0xf]  ;;  %v5412_v14 = vld [vmem:[%s5262_s17 + $0x38] sm:$0xf]  ;;  %v5415_v15 = vld [vmem:[%s5262_s17 + $0x3c] sm:$0xf] }
 0x151   : > { %1000 = vmatprep.subr.bf16.mxu0 %v4321_v19  ;;  %v5422_v16 = vld [vmem:[%s762_s1] sm:$0x1]  ;;  %v5511_v43 = vld [vmem:[%s5303_s22 + $0x1c] sm:$0xf]  ;;  %v5514_v46 = vld [vmem:[%s5303_s22 + $0x20] sm:$0xf] }
 0x152   : > { %v5429_v17 = vld [vmem:[%s765_s7] sm:$0x1]  ;;  %6258 = vst [vmem:[#allocation54_spill] sm:$0xff] %v5511_v43  ;;  %6259 = vst [vmem:[#allocation55_spill] sm:$0xff] %v5514_v46  ;;  %v5526_v51 = vld [vmem:[%s5303_s22 + $0x30] sm:$0xf] }
 0x153   : > { %3996 = vmatpush3.bf16.msra.mxu1 %v4324_v21  ;;  %6247 = vst [vmem:[#allocation44_spill] sm:$0xff] %v5429_v17  ;;  %v5436_v18 = vld [vmem:[%s768_s10] sm:$0x1]  ;;  %v5445_v21 = vld [vmem:[%s5264_s2 + $0x10] sm:$0xff]  ;;  %6263 = vst [vmem:[#allocation59_spill] sm:$0xff] %v5526_v51  ;;  %vm1596_vm1 = vcmask (!%p3778_p0), 261120  }
 0x154   : > { %1001 = vmatpush1.bf16.msra.mxu0 %v4323_v20  ;;  %3997 = vmatprep.subr.bf16.mxu1 %v4734_v4  ;;  %6249 = vst [vmem:[#allocation45_spill] sm:$0xff] %v5436_v18  ;;  %v5439_v19 = vld [vmem:[%s5264_s2] sm:$0xff]  ;;  %v5442_v20 = vld [vmem:[%s5264_s2 + $0x8] sm:$0xff]  ;;  %v5553_v60 = vld [vmem:[%s5303_s22 + $0x54] sm:$0xf]  ;;  %vm4743_vm2 = vmmov (!%p3778_p0), 0  }
 0x155   : > { %1002 = vmatprep.subr.bf16.mxu0 %v4325_v22  ;;  %v5448_v22 = vld [vmem:[%s5264_s2 + $0x18] sm:$0xff]  ;;  %6272 = vst [vmem:[#allocation68_spill] sm:$0xff] %v5553_v60  ;;  %v5562_v51 = vld [vmem:[%s5303_s22 + $0x60] sm:$0xf]  ;;  %v5571_v18 = vld [vmem:[%s5303_s22 + $0x6c] sm:$0xf] }
 0x156   : > { %6275 = vst [vmem:[#allocation71_spill] sm:$0xff] %v5562_v51  ;;  %6278 = vst [vmem:[#allocation74_spill] sm:$0xff] %v5571_v18  ;;  %v5574_v17 = vld [vmem:[%s5303_s22 + $0x70] sm:$0xf]  ;;  %v5583_v46 = vld [vmem:[%s5303_s22 + $0x7c] sm:$0xf] }
 0x157   : > { %3998 = vmatpush3.bf16.msra.mxu1 %v4328_v24  ;;  %v5454_v24 = vld [vmem:[%s5264_s2 + $0x28] sm:$0xff]  ;;  %6279 = vst [vmem:[#allocation75_spill] sm:$0xff] %v5574_v17  ;;  %6282 = vst [vmem:[#allocation78_spill] sm:$0xff] %v5583_v46  ;;  %v4740_v51 = vmov 1983009808   ;;  %vm1785_vm3 = vcmask (!%p3778_p0), 64512  }
 0x158   : > { %1003 = vmatpush1.bf16.msra.mxu0 %v4327_v23  ;;  %3999 = vmatprep.subr.bf16.mxu1 %v4734_v4  ;;  %v5451_v23 = vld [vmem:[%s5264_s2 + $0x20] sm:$0xff]  ;;  %vm1837_vm4 = vcmask (!%p3778_p0), 1043456   ;;  %s4745_s23 = smov (!%p3778_p0), 32   ;;  %s4746_s20 = smov (!%p3778_p0), 96   ;;  %vm2168_vm5 = vcmask (!%p3778_p0), 523264   ;;  %vm2170_vm6 = vcmask (!%p3778_p0), 785408  }
 0x159   : > { %1004 = vmatprep.subr.bf16.mxu0 %v4329_v25  ;;  %v5457_v25 = vld [vmem:[%s5264_s2 + $0x30] sm:$0xff] }
 0x15b   : > { %4000 = vmatpush3.bf16.msra.mxu1 %v4332_v28  ;;  %v5466_v28 = vld [vmem:[%s5264_s2 + $0x48] sm:$0xff] }
 0x15c   : > { %1005 = vmatpush1.bf16.msra.mxu0 %v4331_v27  ;;  %4001 = vmatprep.subr.bf16.mxu1 %v4734_v4  ;;  %v5382_v4 = vld [vmem:[%s5262_s17 + $0x10] sm:$0xf]  ;;  %v5463_v27 = vld [vmem:[%s5264_s2 + $0x40] sm:$0xff] }
 0x15d   : > { %1006 = vmatprep.subr.bf16.mxu0 %v4333_v29  ;;  %v5469_v29 = vld [vmem:[%s5264_s2 + $0x50] sm:$0xff] }
 0x15f   : > { %4002 = vmatpush3.bf16.msra.mxu1 %v4336_v31  ;;  %v5475_v31 = vld [vmem:[%s5264_s2 + $0x60] sm:$0xff] }
 0x160   : > { %1007 = vmatpush1.bf16.msra.mxu0 %v4335_v30  ;;  %v5472_v30 = vld [vmem:[%s5264_s2 + $0x58] sm:$0xff] }
 0x1cf   : > { %v788_v10 = vpop.xlane.xlu0 %787 }
 0x1d0   : > { %v790_v11 = vmul.f32 0.0078125, %v788_v10  ;;  %v5400_v10 = vld [vmem:[%s5262_s17 + $0x28] sm:$0xf] }
 0x1d1   : > { %6243 = vst [vmem:[#allocation42_spill] sm:$0xff] %v5400_v10 }
 0x1d2   : > { %v791_v12 = vsub.f32 %v5308_v1, %v790_v11  ;;  %v5403_v11 = vld [vmem:[%s5262_s17 + $0x2c] sm:$0xf] }
 0x1d3   : > { %6244 = vst [vmem:[#allocation43_spill] sm:$0xff] %v5403_v11 }
 0x1d4   : > { %v792_v13 = vmul.f32 %v791_v12, %v791_v12 }
 0x1d6   : > { %793 = vadd.xlane.f32.xlu0 %v792_v13  ;;  %v5409_v13 = vld [vmem:[%s5262_s17 + $0x34] sm:$0xf] }
 0x263   : > { %v794_v33 = vpop.xlane.xlu0 %793 }
 0x264   : > { %v795_v34 = vmul.f32 0.0078125, %v794_v33  ;;  %v5481_v33 = vld [vmem:[%s5264_s2 + $0x70] sm:$0xff] }
 0x266   : > { %v797_v35 = vadd.f32 %v796_v32, %v795_v34  ;;  %v5478_v32 = vld [vmem:[%s5264_s2 + $0x68] sm:$0xff]  ;;  %v5484_v34 = vld [vmem:[%s5264_s2 + $0x78] sm:$0xff]  ;;  %s4744_s2 = smov (!%p3778_p0), 64  }
 0x268   : > { %4337 = vrsqrt.f32 %v797_v35  ;;  %v5487_v35 = vld [vmem:[%s5297_s18] sm:$0x3] }
 0x269   : > { %6250 = vst [vmem:[#allocation46_spill] sm:$0xff] %v5487_v35  ;;  %v5556_v35 = vld [vmem:[%s5303_s22 + $0x58] sm:$0xf] }
 0x26a   : > { %6273 = vst [vmem:[#allocation69_spill] sm:$0xff] %v5556_v35 }
 0x272   : > { %v4338_v36 = vpop.eup %4337 }
 0x273   : > { %v799_v38 = vmul.f32 %v4338_v36, %v791_v12  ;;  %v5406_v12 = vld [vmem:[%s5262_s17 + $0x30] sm:$0xf]  ;;  %v5490_v36 = vld [vmem:[%s5303_s22] sm:$0xf] }
 0x274   : > { %6251 = vst [vmem:[#allocation47_spill] sm:$0xff] %v5490_v36 }
 0x275   : > { %v806_v40 = vmul.f32 %v3746_v37, %v799_v38  ;;  %v5493_v37 = vld [vmem:[%s5303_s22 + $0x4] sm:$0xf]  ;;  %v5496_v38 = vld [vmem:[%s5303_s22 + $0x8] sm:$0xf] }
 0x276   : > { %6252 = vst [vmem:[#allocation48_spill] sm:$0xff] %v5493_v37  ;;  %6253 = vst [vmem:[#allocation49_spill] sm:$0xff] %v5496_v38 }
 0x277   : > { %v813_v41 = vadd.f32 %v3747_v39, %v806_v40  ;;  %v5499_v39 = vld [vmem:[%s5303_s22 + $0xc] sm:$0xf]  ;;  %v5502_v40 = vld [vmem:[%s5303_s22 + $0x10] sm:$0xf] }
 0x278   : > { %6254 = vst [vmem:[#allocation50_spill] sm:$0xff] %v5499_v39  ;;  %6255 = vst [vmem:[#allocation51_spill] sm:$0xff] %v5502_v40 }
 0x279   : > { %v814_v42 = vpack.c.bf16 %v813_v41, %v813_v41  ;;  %v5505_v41 = vld [vmem:[%s5303_s22 + $0x14] sm:$0xf] }
 0x27a   : > { %6256 = vst [vmem:[#allocation52_spill] sm:$0xff] %v5505_v41 }
 0x27b   : > { %1025 = vmatmul.mubr.bf16.vlgmr.msra.gmra.mrb[0].mxu0 %v814_v42  ;;  %4004 = vmatmul.mubr.bf16.vlgmr.msra.gmra.mrb[0].mxu1 %v814_v42  ;;  %v5508_v42 = vld [vmem:[%s5303_s22 + $0x18] sm:$0xf] }
 0x27c   : > { %6257 = vst [vmem:[#allocation53_spill] sm:$0xff] %v5508_v42  ;;  %v4741_v42 = vmov 1934713408  }
 0x34e   : > { %v1026_v48 = vpop.f32.mrb[0].mxu0  ;;  %v1067_v49 = vpop.f32.mrb[0].mxu1 }
 0x34f   : > { %v5349_v50 = vadd.f32 %v1026_v48, %v852_v47  ;;  %v1028_v52 = vpop.f32.mrb[1].mxu0  ;;  %v4005_v53 = vpop.f32.mrb[1].mxu1  ;;  %v5355_v59 = vadd.f32 %v1067_v49, %v860_v58  ;;  %v5517_v47 = vld [vmem:[%s5303_s22 + $0x24] sm:$0xf]  ;;  %v5520_v48 = vld [vmem:[%s5303_s22 + $0x28] sm:$0xf] }
 0x350   : > { %v1030_v54 = vpop.f32.mrb[2].mxu0  ;;  %v1070_v55 = vpop.f32.mrb[2].mxu1  ;;  %v5363_v62 = vadd.f32 %v1028_v52, %v856_v61  ;;  %6260 = vst [vmem:[#allocation56_spill] sm:$0xff] %v5517_v47  ;;  %6261 = vst [vmem:[#allocation57_spill] sm:$0xff] %v5520_v48  ;;  %v5523_v49 = vld [vmem:[%s5303_s22 + $0x2c] sm:$0xf] }
 0x351   : > { %v1031_v56 = vpop.f32.mrb[3].mxu0  ;;  %v4006_v57 = vpop.f32.mrb[3].mxu1  ;;  %1080 = vrot.lane.b32.xlu0 %v5349_v50, %s4737_s28  ;;  %1074 = vrot.lane.b32.xlu1 %v5349_v50, %s4738_s30  ;;  %6262 = vst [vmem:[#allocation58_spill] sm:$0xff] %v5523_v49  ;;  %v5529_v52 = vld [vmem:[%s5303_s22 + $0x34] sm:$0xf] }
 0x352   : > { %6264 = vst [vmem:[#allocation60_spill] sm:$0xff] %v5529_v52  ;;  %v5532_v53 = vld [vmem:[%s5303_s22 + $0x38] sm:$0xf]  ;;  %v5535_v54 = vld [vmem:[%s5303_s22 + $0x3c] sm:$0xf] }
 0x353   : > { %6265 = vst [vmem:[#allocation61_spill] sm:$0xff] %v5532_v53  ;;  %6266 = vst [vmem:[#allocation62_spill] sm:$0xff] %v5535_v54  ;;  %v5538_v55 = vld [vmem:[%s5303_s22 + $0x40] sm:$0xf]  ;;  %v5541_v56 = vld [vmem:[%s5303_s22 + $0x44] sm:$0xf] }
 0x354   : > { %6267 = vst [vmem:[#allocation63_spill] sm:$0xff] %v5538_v55  ;;  %6268 = vst [vmem:[#allocation64_spill] sm:$0xff] %v5541_v56  ;;  %v5544_v57 = vld [vmem:[%s5303_s22 + $0x48] sm:$0xf]  ;;  %v5547_v58 = vld [vmem:[%s5303_s22 + $0x4c] sm:$0xf] }
 0x355   : > { %1077 = vrot.lane.b32.xlu1 %v5349_v50, %s4739_s29  ;;  %6269 = vst [vmem:[#allocation65_spill] sm:$0xff] %v5544_v57  ;;  %6270 = vst [vmem:[#allocation66_spill] sm:$0xff] %v5547_v58  ;;  %v5550_v61 = vld [vmem:[%s5303_s22 + $0x50] sm:$0xf]  ;;  %v5559_v53 = vld [vmem:[%s5303_s22 + $0x5c] sm:$0xf] }
 0x356   : > { %6271 = vst [vmem:[#allocation67_spill] sm:$0xff] %v5550_v61  ;;  %6274 = vst [vmem:[#allocation70_spill] sm:$0xff] %v5559_v53  ;;  %v5565_v54 = vld [vmem:[%s5303_s22 + $0x64] sm:$0xf]  ;;  %v5568_v52 = vld [vmem:[%s5303_s22 + $0x68] sm:$0xf] }
 0x357   : > { %6276 = vst [vmem:[#allocation72_spill] sm:$0xff] %v5565_v54  ;;  %6277 = vst [vmem:[#allocation73_spill] sm:$0xff] %v5568_v52  ;;  %v5577_v48 = vld [vmem:[%s5303_s22 + $0x74] sm:$0xf]  ;;  %v5580_v49 = vld [vmem:[%s5303_s22 + $0x78] sm:$0xf]  ;;  %v1086_v54 = vunpack.c.l.s4 %v4740_v51  ;;  %v1118_v52 = vunpack.c.l.s4 %v4741_v42 }
 0x358   : > { %6280 = vst [vmem:[#allocation76_spill] sm:$0xff] %v5577_v48  ;;  %6281 = vst [vmem:[#allocation77_spill] sm:$0xff] %v5580_v49  ;;  %v5590_v47 = vld [vmem:[%s775_s3] sm:$0x1] }
 0x359   : > { %1374 = vrot.lane.b32.xlu1 %v5355_v59, %s4738_s30  ;;  %6284 = vst [vmem:[#allocation79_spill] sm:$0xff] %v5590_v47  ;;  %v1087_v43 = vunpack.c.0.s8 %v1086_v54  ;;  %v1119_v17 = vunpack.c.0.s8 %v1118_v52 }
 0x35b   : > { %v5593_v48 = vsub.s32 %v1087_v43, %v5342_v44  ;;  %v5598_v47 = vsub.s32 %v1119_v17, %v5342_v44 }
 0x35d   : > { %1377 = vrot.lane.b32.xlu1 %v5355_v59, %s4739_s29 }
 0x361   : > { %1224 = vrot.lane.b32.xlu1 %v5363_v62, %s4738_s30 }
 0x365   : > { %1227 = vrot.lane.b32.xlu1 %v5363_v62, %s4739_s29 }
 0x369   : > { %1230 = vrot.lane.b32.xlu1 %v5363_v62, %s4737_s28 }
 0x36d   : > { %1380 = vrot.lane.b32.xlu1 %v5355_v59, %s4737_s28 }
 0x3c3   : > { %v1081_v18 = vpop.permute.xlu0 %1080  ;;  %v1075_v35 = vpop.permute.xlu1 %1074 }
 0x3c4   : > { %v1099_v49 = vcombine.low %v1075_v35, %v1081_v18  ;;  %v1100_v53 = vcombine.high %v1075_v35, %v1081_v18 }
 0x3c6   : > { %v1107_v51 = vrot.slane %v1099_v49, %v5593_v48  ;;  %v1114_v42 = vrot.slane %v1100_v53, %v5593_v48 }
 0x3c7   : > { %v1078_v46 = vpop.permute.xlu1 %1077 }
 0x3c8   : > { %v1083_v40 = vcombine.low %v5349_v50, %v1078_v46  ;;  %v1084_v41 = vcombine.high %v5349_v50, %v1078_v46 }
 0x3ca   : > { %v1091_v54 = vrot.slane %v1083_v40, %v5593_v48  ;;  %v1098_v52 = vrot.slane %v1084_v41, %v5593_v48 }
 0x3cb   : > { %v1375_v43 = vpop.permute.xlu1 %1374 }
 0x3cc   : > { %v1115_v61 = vcombine.low %v1091_v54, %v1107_v51  ;;  %v1116_v60 = vcombine.high %v1091_v54, %v1107_v51  ;;  %v1131_v18 = vcombine.low %v1098_v52, %v1114_v42  ;;  %v1132_v35 = vcombine.high %v1098_v52, %v1114_v42 }
 0x3ce   : > { %v1123_v38 = vrot.slane %v1115_v61, %v5598_v47  ;;  %v1130_v50 = vrot.slane %v1116_v60, %v5598_v47  ;;  %v1139_v44 = vrot.slane %v1131_v18, %v5598_v47  ;;  %v1146_v17 = vrot.slane %v1132_v35, %v5598_v47 }
 0x3cf   : > { %v1378_v46 = vpop.permute.xlu1 %1377 }
 0x3d0   : > { %v1151_v49 = vcombine.low %v1123_v38, %v1130_v50  ;;  %v3772_v53 = vcombine.high %v1123_v38, %v1130_v50  ;;  %v1167_v39 = vcombine.low %v1139_v44, %v1146_v17  ;;  %v3773_v40 = vcombine.high %v1139_v44, %v1146_v17 }
 0x3d2   : > { %v1158_v41 = vrot.slane %v1151_v49, %v5593_v48  ;;  %v1166_v57 = vrot.slane %v3772_v53, %v5593_v48  ;;  %v1174_v51 = vrot.slane %v1167_v39, %v5593_v48  ;;  %v1182_v42 = vrot.slane %v3773_v40, %v5593_v48 }
 0x3d3   : > { %v1225_v61 = vpop.permute.xlu1 %1224 }
 0x3d4   : > { %v1183_v54 = vcombine.low %v1158_v41, %v1166_v57  ;;  %v1184_v60 = vcombine.high %v1158_v41, %v1166_v57  ;;  %v1199_v52 = vcombine.low %v1174_v51, %v1182_v42  ;;  %v1200_v18 = vcombine.high %v1174_v51, %v1182_v42 }
 0x3d6   : > { %v1191_v35 = vrot.slane %v1183_v54, %v5598_v47  ;;  %v1198_v58 = vrot.slane %v1184_v60, %v5598_v47  ;;  %v1207_v38 = vrot.slane %v1199_v52, %v5598_v47  ;;  %v1214_v50 = vrot.slane %v1200_v18, %v5598_v47 }
 0x3d7   : > { %v1228_v44 = vpop.permute.xlu1 %1227 }
 0x3d8   : > { %v1215_v17 = vcombine.low %v1191_v35, %v1207_v38  ;;  %v1216_v49 = vcombine.high %v1191_v35, %v1207_v38  ;;  %v1217_v53 = vcombine.low %v1198_v58, %v1214_v50  ;;  %v1218_v39 = vcombine.high %v1198_v58, %v1214_v50 }
 0x3d9   : > { %v1233_v40 = vcombine.low %v5363_v62, %v1228_v44  ;;  %v1234_v36 = vcombine.high %v5363_v62, %v1228_v44  ;;  %v1383_v62 = vcombine.low %v5355_v59, %v1378_v46  ;;  %v1384_v50 = vcombine.high %v5355_v59, %v1378_v46 }
 0x3da   : > { %v5618_v57 = vpack.c.bf16 %v1215_v17, %v1215_v17  ;;  %v5620_v41 = vpack.c.bf16 %v1216_v49, %v1216_v49  ;;  %v5622_v51 = vpack.c.bf16 %v1217_v53, %v1217_v53  ;;  %v5624_v42 = vpack.c.bf16 %v1218_v39, %v1218_v39 }
 0x3db   : > { %v1231_v54 = vpop.permute.xlu1 %1230  ;;  %v1241_v18 = vrot.slane %v1233_v40, %v5593_v48  ;;  %v1248_v35 = vrot.slane %v1234_v36, %v5593_v48 }
 0x3dc   : > { %6285 = vst [vmem:[#allocation80_spill] sm:$0xff] %v5620_v41  ;;  %6286 = vst [vmem:[#allocation81_spill] sm:$0xff] %v5622_v51  ;;  %v1249_v60 = vcombine.low %v1225_v61, %v1231_v54  ;;  %v1250_v52 = vcombine.high %v1225_v61, %v1231_v54 }
 0x3dd   : > { %6287 = vst [vmem:[#allocation82_spill] sm:$0xff] %v5624_v42 }
 0x3de   : > { %v1257_v58 = vrot.slane %v1249_v60, %v5593_v48  ;;  %v1264_v38 = vrot.slane %v1250_v52, %v5593_v48  ;;  %v1391_v60 = vrot.slane %v1383_v62, %v5593_v48  ;;  %v1398_v52 = vrot.slane %v1384_v50, %v5593_v48 }
 0x3df   : > { %v1381_v44 = vpop.permute.xlu1 %1380 }
 0x3e0   : > { %v1265_v17 = vcombine.low %v1241_v18, %v1257_v58  ;;  %v1266_v49 = vcombine.high %v1241_v18, %v1257_v58  ;;  %v1281_v53 = vcombine.low %v1248_v35, %v1264_v38  ;;  %v1282_v39 = vcombine.high %v1248_v35, %v1264_v38 }
 0x3e1   : > { %v1399_v37 = vcombine.low %v1375_v43, %v1381_v44  ;;  %v1400_v55 = vcombine.high %v1375_v43, %v1381_v44 }
 0x3e2   : > { %v1273_v61 = vrot.slane %v1265_v17, %v5598_v47  ;;  %v1280_v40 = vrot.slane %v1266_v49, %v5598_v47  ;;  %v1289_v36 = vrot.slane %v1281_v53, %v5598_v47  ;;  %v1296_v54 = vrot.slane %v1282_v39, %v5598_v47 }
 0x3e3   : > { %v1407_v59 = vrot.slane %v1399_v37, %v5593_v48  ;;  %v1414_v46 = vrot.slane %v1400_v55, %v5593_v48 }
 0x3e4   : > { %v1301_v18 = vcombine.low %v1273_v61, %v1280_v40  ;;  %v3774_v35 = vcombine.high %v1273_v61, %v1280_v40  ;;  %v1317_v58 = vcombine.low %v1289_v36, %v1296_v54  ;;  %v3775_v43 = vcombine.high %v1289_v36, %v1296_v54 }
 0x3e5   : > { %v1415_v38 = vcombine.low %v1391_v60, %v1407_v59  ;;  %v1416_v44 = vcombine.high %v1391_v60, %v1407_v59  ;;  %v1431_v17 = vcombine.low %v1398_v52, %v1414_v46  ;;  %v1432_v49 = vcombine.high %v1398_v52, %v1414_v46 }
 0x3e6   : > { %v1308_v53 = vrot.slane %v1301_v18, %v5593_v48  ;;  %v1316_v39 = vrot.slane %v3774_v35, %v5593_v48  ;;  %v1324_v62 = vrot.slane %v1317_v58, %v5593_v48  ;;  %v1332_v50 = vrot.slane %v3775_v43, %v5593_v48 }
 0x3e7   : > { %v1423_v37 = vrot.slane %v1415_v38, %v5598_v47  ;;  %v1430_v55 = vrot.slane %v1416_v44, %v5598_v47  ;;  %v1439_v61 = vrot.slane %v1431_v17, %v5598_v47  ;;  %v1446_v40 = vrot.slane %v1432_v49, %v5598_v47 }
 0x3e8   : > { %v1333_v36 = vcombine.low %v1308_v53, %v1316_v39  ;;  %v1334_v54 = vcombine.high %v1308_v53, %v1316_v39  ;;  %v1349_v60 = vcombine.low %v1324_v62, %v1332_v50  ;;  %v1350_v52 = vcombine.high %v1324_v62, %v1332_v50 }
 0x3e9   : > { %v1451_v59 = vcombine.low %v1423_v37, %v1430_v55  ;;  %v3776_v46 = vcombine.high %v1423_v37, %v1430_v55  ;;  %v1467_v18 = vcombine.low %v1439_v61, %v1446_v40  ;;  %v3777_v35 = vcombine.high %v1439_v61, %v1446_v40 }
 0x3ea   : > { %v1341_v58 = vrot.slane %v1333_v36, %v5598_v47  ;;  %v1348_v43 = vrot.slane %v1334_v54, %v5598_v47  ;;  %v1357_v38 = vrot.slane %v1349_v60, %v5598_v47  ;;  %v1364_v44 = vrot.slane %v1350_v52, %v5598_v47 }
 0x3eb   : > { %v1458_v17 = vrot.slane %v1451_v59, %v5593_v48  ;;  %v1466_v49 = vrot.slane %v3776_v46, %v5593_v48  ;;  %v1474_v53 = vrot.slane %v1467_v18, %v5593_v48  ;;  %v1482_v39 = vrot.slane %v3777_v35, %v5593_v48 }
 0x3ec   : > { %v1365_v62 = vcombine.low %v1341_v58, %v1357_v38  ;;  %v1366_v50 = vcombine.high %v1341_v58, %v1357_v38  ;;  %v1367_v37 = vcombine.low %v1348_v43, %v1364_v44  ;;  %v1368_v55 = vcombine.high %v1348_v43, %v1364_v44 }
 0x3ed   : > { %v1483_v61 = vcombine.low %v1458_v17, %v1466_v49  ;;  %v1484_v40 = vcombine.high %v1458_v17, %v1466_v49  ;;  %v1499_v36 = vcombine.low %v1474_v53, %v1482_v39  ;;  %v1500_v54 = vcombine.high %v1474_v53, %v1482_v39  ;;  %1595 = sbr.rel (%p3778_p0) target bundleno = 2892 (0xb4c), region = 108 }
 0x3ee   : > { %v5656_v56 = vpack.c.bf16 %v1365_v62, %v1365_v62  ;;  %v5658_v60 = vpack.c.bf16 %v1366_v50, %v1366_v50  ;;  %v5660_v52 = vpack.c.bf16 %v1367_v37, %v1367_v37  ;;  %v5662_v59 = vpack.c.bf16 %v1368_v55, %v1368_v55 }
 0x3ef   : > { %v1491_v46 = vrot.slane %v1483_v61, %v5598_v47  ;;  %v1498_v18 = vrot.slane %v1484_v40, %v5598_v47  ;;  %v1507_v35 = vrot.slane %v1499_v36, %v5598_v47  ;;  %v1514_v58 = vrot.slane %v1500_v54, %v5598_v47 }
 0x3f0   : > { %6288 = vst [vmem:[#allocation83_spill] sm:$0xff] %v5662_v59  ;;  %v6157_v50 = vmov (!%p3778_p0), 0.0   ;;  %v1601_v37 = vsel (!%p3778_p0), %vm1596_vm1, %v5656_v56, 0  ;;  %v1647_v55 = vsel (!%p3778_p0), %vm1596_vm1, %v5658_v60, 0  ;;  %v1693_v61 = vsel (!%p3778_p0), %vm1596_vm1, %v5660_v52, 0 }
 0x3f1   : > { %v1515_v43 = vcombine.low %v1491_v46, %v1507_v35  ;;  %v1516_v38 = vcombine.high %v1491_v46, %v1507_v35  ;;  %v1517_v44 = vcombine.low %v1498_v18, %v1514_v58  ;;  %v1518_v17 = vcombine.high %v1498_v18, %v1514_v58  ;;  %4007 = vmatprep.subr.bf16.mxu1 (!%p3778_p0), %v6157_v50 }
 0x3f2   : > { %4009 = vmatprep.mubr.msk.bf16.mxu1 (!%p3778_p0), %vm4743_vm2, %v6157_v50  ;;  %4008 = vmatpush3.bf16.xpose.msra.mxu1 (!%p3778_p0), %v1601_v37  ;;  %v1739_v40 = vsel (!%p3778_p0), %vm1596_vm1, %v5662_v59, 0 }
 0x3f3   : > { %v5668_v49 = vpack.c.bf16 %v1515_v43, %v1515_v43  ;;  %v5670_v53 = vpack.c.bf16 %v1516_v38, %v1516_v38  ;;  %v5672_v39 = vpack.c.bf16 %v1517_v44, %v1517_v44  ;;  %v5674_v62 = vpack.c.bf16 %v1518_v17, %v1518_v17  ;;  %4031 = vmatprep.subr.bf16.mxu0 (!%p3778_p0), %v6157_v50 }
 0x3f4   : > { %4013 = vmatprep.subr.bf16.mxu1 %v6157_v50  ;;  %4033 = vmatprep.mubr.msk.bf16.mxu0 %vm4743_vm2, %v6157_v50 }
 0x3f9   : > { %4010 = vmatmul.mubr.msk.bf16.vlgmr.msra.gmra.mrb[0].mxu1 %vm1596_vm1, %v5618_v57 }
 0x3fa   : > { %4014 = vmatpush3.bf16.xpose.msra.mxu1 %v1647_v55  ;;  %4015 = vmatprep.mubr.msk.bf16.mxu1 %vm4743_vm2, %v6157_v50 }
 0x3fb   : > { %4019 = vmatprep.subr.bf16.mxu1 %v6157_v50 }
 0x401   : > { %4016 = vmatmul.mubr.msk.bf16.vlgmr.msra.gmra.mrb[4].mxu1 %vm1596_vm1, %v5620_v41 }
 0x402   : > { %4020 = vmatpush3.bf16.xpose.msra.mxu1 %v1693_v61  ;;  %4021 = vmatprep.mubr.msk.bf16.mxu1 %vm4743_vm2, %v6157_v50 }
 0x403   : > { %4025 = vmatprep.subr.bf16.mxu1 %v6157_v50 }
 0x409   : > { %4022 = vmatmul.mubr.msk.bf16.vlgmr.msra.gmra.mrb[8].mxu1 %vm1596_vm1, %v5622_v51 }
 0x40a   : > { %4026 = vmatpush3.bf16.xpose.msra.mxu1 %v1739_v40  ;;  %4027 = vmatprep.mubr.msk.bf16.mxu1 %vm4743_vm2, %v6157_v50 }
 0x40b   : > { %4037 = vmatprep.subr.bf16.mxu1 %v6157_v50 }
 0x411   : > { %4028 = vmatmul.mubr.msk.bf16.vlgmr.msra.gmra.mrb[12].mxu1 %vm1596_vm1, %v5624_v42 }
 0x412   : > { %4039 = vmatprep.mubr.msk.bf16.mxu1 %vm4743_vm2, %v6157_v50 }
 0x4cc   : > { %v1637_v36 = vpop.f32.mrb[0].mxu1 }
 0x4cd   : > { %v1781_v54 = vmul.f32 0.17677669, %v1637_v36  ;;  %v4011_v46 = vpop.f32.mrb[1].mxu1 }
 0x4ce   : > { %v1640_v18 = vpop.f32.mrb[2].mxu1 }
 0x4cf   : > { %v4012_v35 = vpop.f32.mrb[3].mxu1  ;;  %v1786_v58 = vsel %vm1785_vm3, %v1781_v54, -inf }
 0x4d0   : > { %1787 = vmax.xlane.f32.xlu0 %v1786_v58 }
 0x4d4   : > { %v1683_v43 = vpop.f32.mrb[4].mxu1 }
 0x4d5   : > { %v1782_v38 = vmul.f32 0.17677669, %v1683_v43  ;;  %v4017_v44 = vpop.f32.mrb[5].mxu1 }
 0x4d6   : > { %v1686_v17 = vpop.f32.mrb[6].mxu1 }
 0x4d7   : > { %v4018_v37 = vpop.f32.mrb[7].mxu1  ;;  %v1789_v55 = vsel %vm1785_vm3, %v1782_v38, -inf }
 0x4d8   : > { %1790 = vmax.xlane.f32.xlu0 %v1789_v55 }
 0x4dc   : > { %v1729_v61 = vpop.f32.mrb[8].mxu1 }
 0x4dd   : > { %v1783_v40 = vmul.f32 0.17677669, %v1729_v61  ;;  %v4023_v50 = vpop.f32.mrb[9].mxu1 }
 0x4de   : > { %v1732_v42 = vpop.f32.mrb[10].mxu1 }
 0x4df   : > { %v4024_v51 = vpop.f32.mrb[11].mxu1  ;;  %v1792_v36 = vsel %vm1785_vm3, %v1783_v40, -inf }
 0x4e0   : > { %1793 = vmax.xlane.f32.xlu1 %v1792_v36 }
 0x4e4   : > { %v1775_v46 = vpop.f32.mrb[12].mxu1 }
 0x4e5   : > { %v1784_v18 = vmul.f32 0.17677669, %v1775_v46  ;;  %v4029_v35 = vpop.f32.mrb[13].mxu1 }
 0x4e6   : > { %v1778_v58 = vpop.f32.mrb[14].mxu1 }
 0x4e7   : > { %v4030_v59 = vpop.f32.mrb[15].mxu1  ;;  %v1795_v43 = vsel %vm1785_vm3, %v1784_v18, -inf }
 0x4e8   : > { %1796 = vmax.xlane.f32.xlu1 %v1795_v43 }
 0x55d   : > { %v1788_v44 = vpop.xlane.xlu0 %1787 }
 0x55e   : > { %v1798_v17 = vsub.f32 %v1781_v54, %v1788_v44 }
 0x560   : > { %v1802_v37 = vmul.f32 1.442695, %v1798_v17 }
 0x562   : > { %4339 = vpow2.f32 %v1802_v37 }
 0x565   : > { %v1791_v55 = vpop.xlane.xlu0 %1790 }
 0x566   : > { %v1799_v61 = vsub.f32 %v1782_v38, %v1791_v55 }
 0x568   : > { %v1804_v50 = vmul.f32 1.442695, %v1799_v61 }
 0x56a   : > { %4341 = vpow2.f32 %v1804_v50 }
 0x56c   : > { %v4340_v51 = vpop.eup %4339 }
 0x56d   : > { %v1794_v42 = vpop.xlane.xlu1 %1793  ;;  %v1810_v36 = vsel %vm1785_vm3, %v4340_v51, 0.0 }
 0x56e   : > { %v1800_v41 = vsub.f32 %v1783_v40, %v1794_v42  ;;  %1811 = vadd.xlane.f32.xlu0 %v1810_v36  ;;  %v6289_v40 = vmov 0.0  }
 0x570   : > { %v1806_v46 = vmul.f32 1.442695, %v1800_v41  ;;  %v1839_v41 = vsel %vm1837_vm4, %v5668_v49, 0 }
 0x571   : > { %4032 = vmatpush3.bf16.msra.mxu0 %v1839_v41 }
 0x572   : > { %4343 = vpow2.f32 %v1806_v46  ;;  %4043 = vmatprep.subr.bf16.mxu0 %v6289_v40  ;;  %v1931_v46 = vsel %vm1837_vm4, %v5672_v39, 0 }
 0x574   : > { %v4342_v59 = vpop.eup %4341 }
 0x575   : > { %v1797_v35 = vpop.xlane.xlu1 %1796  ;;  %v1813_v58 = vsel %vm1785_vm3, %v4342_v59, 0.0 }
 0x576   : > { %v1801_v43 = vsub.f32 %v1784_v18, %v1797_v35  ;;  %1814 = vadd.xlane.f32.xlu1 %v1813_v58  ;;  %v1885_v18 = vsel %vm1837_vm4, %v5670_v53, 0 }
 0x577   : > { %4038 = vmatpush3.bf16.msra.mxu1 %v1885_v18 }
 0x578   : > { %v1808_v54 = vmul.f32 1.442695, %v1801_v43  ;;  %4049 = vmatprep.subr.bf16.mxu1 %v6289_v40 }
 0x57a   : > { %4345 = vpow2.f32 %v1808_v54 }
 0x57c   : > { %v4344_v44 = vpop.eup %4343 }
 0x57d   : > { %v1816_v38 = vsel %vm1785_vm3, %v4344_v44, 0.0 }
 0x57e   : > { %1817 = vadd.xlane.f32.xlu0 %v1816_v38 }
 0x584   : > { %v4346_v17 = vpop.eup %4345 }
 0x585   : > { %v1819_v37 = vsel %vm1785_vm3, %v4346_v17, 0.0 }
 0x586   : > { %1820 = vadd.xlane.f32.xlu1 %v1819_v37 }
 0x5fb   : > { %v1812_v55 = vpop.xlane.xlu0 %1811 }
 0x5fc   : > { %4347 = vrcp.f32 %v1812_v55 }
 0x603   : > { %v1815_v61 = vpop.xlane.xlu1 %1814 }
 0x604   : > { %4349 = vrcp.f32 %v1815_v61 }
 0x606   : > { %v4348_v50 = vpop.eup %4347 }
 0x607   : > { %v1826_v42 = vmul.f32 %v4348_v50, %v4340_v51  ;;  %v1977_v51 = vsel %vm1837_vm4, %v5674_v62, 0  ;;  %v3789_v50 = vcombine.low %v5370_v63, %v5373_v0 }
 0x609   : > { %v1830_v36 = vpack.c.bf16 %v1826_v42, %v1826_v42  ;;  %v3790_v42 = vcombine.low %v5376_v2, %v5379_v3 }
 0x60b   : > { %4034 = vmatmul.mubr.msk.bf16.vlgmr.msra.gmra.mrb[0].mxu0 %vm1785_vm3, %v1830_v36  ;;  %v1818_v35 = vpop.xlane.xlu0 %1817  ;;  %v3793_v36 = vcombine.low %v5394_v8, %v5397_v9 }
 0x60c   : > { %4351 = vrcp.f32 %v1818_v35  ;;  %4044 = vmatpush3.bf16.msra.mxu0 %v1931_v46  ;;  %4045 = vmatprep.mubr.msk.bf16.mxu0 %vm4743_vm2, %v6289_v40  ;;  %v3794_v46 = vcombine.low %v5400_v10, %v5403_v11 }
 0x60d   : > { %4055 = vmatprep.subr.bf16.mxu0 %v6289_v40 }
 0x60e   : > { %v4350_v58 = vpop.eup %4349 }
 0x60f   : > { %v1827_v43 = vmul.f32 %v4350_v58, %v4342_v59 }
 0x611   : > { %v1831_v54 = vpack.c.bf16 %v1827_v43, %v1827_v43 }
 0x613   : > { %4040 = vmatmul.mubr.msk.bf16.vlgmr.msra.gmra.mrb[16].mxu1 %vm1785_vm3, %v1831_v54  ;;  %v1821_v38 = vpop.xlane.xlu1 %1820 }
 0x614   : > { %4353 = vrcp.f32 %v1821_v38  ;;  %4050 = vmatpush3.bf16.msra.mxu1 %v1977_v51  ;;  %4051 = vmatprep.mubr.msk.bf16.mxu1 %vm4743_vm2, %v6289_v40 }
 0x616   : > { %v4352_v37 = vpop.eup %4351 }
 0x617   : > { %v1828_v41 = vmul.f32 %v4352_v37, %v4344_v44  ;;  %v3791_v44 = vcombine.low %v5382_v4, %v5385_v5 }
 0x619   : > { %v1832_v18 = vpack.c.bf16 %v1828_v41, %v1828_v41 }
 0x61b   : > { %4046 = vmatmul.mubr.msk.bf16.vlgmr.msra.gmra.mrb[4].mxu0 %vm1785_vm3, %v1832_v18 }
 0x61c   : > { %4071 = vmatprep.mubr.msk.bf16.mxu0 %vm4743_vm2, %v6289_v40  ;;  %4056 = vmatpush3.bf16.msra.mxu0 %v3789_v50 }
 0x61d   : > { %4057 = vmatprep.subr.bf16.mxu0 %v6289_v40 }
 0x61e   : > { %v4354_v59 = vpop.eup %4353 }
 0x61f   : > { %v1829_v55 = vmul.f32 %v4354_v59, %v4346_v17  ;;  %v3792_v17 = vcombine.low %v5388_v6, %v5391_v7 }
 0x620   : > { %4058 = vmatpush3.bf16.msra.mxu0 %v3790_v42 }
 0x621   : > { %v1833_v61 = vpack.c.bf16 %v1829_v55, %v1829_v55  ;;  %4059 = vmatprep.subr.bf16.mxu0 %v6289_v40 }
 0x623   : > { %4052 = vmatmul.mubr.msk.bf16.vlgmr.msra.gmra.mrb[20].mxu1 %vm1785_vm3, %v1833_v61 }
 0x624   : > { %4060 = vmatpush3.bf16.msra.mxu0 %v3791_v44 }
 0x625   : > { %4061 = vmatprep.subr.bf16.mxu0 %v6289_v40 }
 0x628   : > { %4062 = vmatpush3.bf16.msra.mxu0 %v3792_v17 }
 0x629   : > { %4063 = vmatprep.subr.bf16.mxu0 %v6289_v40 }
 0x62c   : > { %4064 = vmatpush3.bf16.msra.mxu0 %v3793_v36 }
 0x62d   : > { %4065 = vmatprep.subr.bf16.mxu0 %v6289_v40 }
 0x630   : > { %4066 = vmatpush3.bf16.msra.mxu0 %v3794_v46 }
 0x631   : > { %4067 = vmatprep.subr.bf16.mxu0 %v6289_v40 }
 0x6de   : > { %v1875_v35 = vpop.f32.mrb[0].mxu0 }
 0x6df   : > { %v4035_v58 = vpop.f32.mrb[1].mxu0 }
 0x6e0   : > { %v1878_v43 = vpop.f32.mrb[2].mxu0 }
 0x6e1   : > { %v4036_v54 = vpop.f32.mrb[3].mxu0 }
 0x6e6   : > { %v1921_v51 = vpop.f32.mrb[16].mxu1 }
 0x6e7   : > { %v4041_v38 = vpop.f32.mrb[17].mxu1 }
 0x6e8   : > { %v1924_v37 = vpop.f32.mrb[18].mxu1 }
 0x6e9   : > { %v4042_v41 = vpop.f32.mrb[19].mxu1 }
 0x6ee   : > { %v1967_v18 = vpop.f32.mrb[4].mxu0 }
 0x6ef   : > { %v2019_v59 = vcombine.low %v1875_v35, %v1967_v18  ;;  %v2020_v55 = vcombine.high %v1875_v35, %v1967_v18  ;;  %v4047_v61 = vpop.f32.mrb[5].mxu0  ;;  %v3795_v35 = vcombine.low %v5406_v12, %v5409_v13 }
 0x6f0   : > { %v1970_v50 = vpop.f32.mrb[6].mxu0 }
 0x6f1   : > { %v4048_v42 = vpop.f32.mrb[7].mxu0  ;;  %v2027_v11 = vrot.slane %v2019_v59, %v5593_v48  ;;  %v2034_v58 = vrot.slane %v2020_v55, %v5593_v48  ;;  %4068 = vmatpush3.bf16.msra.mxu0 %v3795_v35  ;;  %v3796_v50 = vcombine.low %v5412_v14, %v5415_v15 }
 0x6f2   : > { %4069 = vmatprep.subr.bf16.mxu0 %v6289_v40 }
 0x6f5   : > { %4070 = vmatpush3.bf16.msra.mxu0 %v3796_v50 }
 0x6f6   : > { %v2013_v44 = vpop.f32.mrb[20].mxu1 }
 0x6f7   : > { %v2035_v17 = vcombine.low %v1921_v51, %v2013_v44  ;;  %v2036_v36 = vcombine.high %v1921_v51, %v2013_v44  ;;  %v4053_v46 = vpop.f32.mrb[21].mxu1 }
 0x6f8   : > { %v2016_v10 = vpop.f32.mrb[22].mxu1 }
 0x6f9   : > { %v2043_v43 = vrot.slane %v2035_v17, %v5593_v48  ;;  %v2050_v54 = vrot.slane %v2036_v36, %v5593_v48  ;;  %v4054_v38 = vpop.f32.mrb[23].mxu1 }
 0x6fb   : > { %v2051_v37 = vcombine.low %v2027_v11, %v2043_v43  ;;  %v2052_v41 = vcombine.high %v2027_v11, %v2043_v43  ;;  %v2067_v18 = vcombine.low %v2034_v58, %v2050_v54  ;;  %v2068_v61 = vcombine.high %v2034_v58, %v2050_v54 }
 0x6fd   : > { %v2059_v51 = vrot.slane %v2051_v37, %v5598_v47  ;;  %v2066_v10 = vrot.slane %v2052_v41, %v5598_v47  ;;  %v2075_v59 = vrot.slane %v2067_v18, %v5598_v47  ;;  %v2082_v55 = vrot.slane %v2068_v61, %v5598_v47 }
 0x6ff   : > { %v2087_v42 = vcombine.low %v2059_v51, %v2066_v10  ;;  %v3787_v44 = vcombine.high %v2059_v51, %v2066_v10  ;;  %v2103_v17 = vcombine.low %v2075_v59, %v2082_v55  ;;  %v3788_v11 = vcombine.high %v2075_v59, %v2082_v55 }
 0x701   : > { %v2094_v36 = vrot.slane %v2087_v42, %v5593_v48  ;;  %v2102_v46 = vrot.slane %v3787_v44, %v5593_v48  ;;  %v2110_v58 = vrot.slane %v2103_v17, %v5593_v48  ;;  %v2118_v43 = vrot.slane %v3788_v11, %v5593_v48 }
 0x703   : > { %v2120_v54 = vcombine.high %v2094_v36, %v2102_v46  ;;  %v2136_v38 = vcombine.high %v2110_v58, %v2118_v43  ;;  %v2119_v35 = vcombine.low %v2094_v36, %v2102_v46  ;;  %v2135_v40 = vcombine.low %v2110_v58, %v2118_v43 }
 0x704   : > { %v2177_v58 = vrot.slane %v5422_v16, %v5345_v45 }
 0x705   : > { %v2134_v37 = vrot.slane %v2120_v54, %v5598_v47  ;;  %v2150_v41 = vrot.slane %v2136_v38, %v5598_v47  ;;  %v2127_v18 = vrot.slane %v2119_v35, %v5598_v47  ;;  %v2143_v61 = vrot.slane %v2135_v40, %v5598_v47 }
 0x707   : > { %v2153_v51 = vcombine.low %v2134_v37, %v2150_v41  ;;  %v2152_v10 = vcombine.high %v2127_v18, %v2143_v61  ;;  %v2154_v59 = vcombine.high %v2134_v37, %v2150_v41  ;;  %v2151_v55 = vcombine.low %v2127_v18, %v2143_v61 }
 0x708   : > { %v3798_v41 = vcombine.high %v5439_v19, %v5442_v20  ;;  %v3797_v18 = vcombine.low %v5439_v19, %v5442_v20  ;;  %v3800_v61 = vcombine.high %v5445_v21, %v5448_v22 }
 0x709   : > { %2160 = vrot.lane.b32.xlu1 %v2153_v51, %s4744_s2  ;;  %2156 = vrot.lane.b32.xlu0 %v2152_v10, %s4745_s23  ;;  %v3799_v51 = vcombine.low %v5445_v21, %v5448_v22  ;;  %v3802_v10 = vcombine.high %v5451_v23, %v5454_v24 }
 0x70a   : > { %2385 = vmatprep.subr.bf16.mxu1 %v3798_v41  ;;  %v4747_v41 = vmov 0  }
 0x70b   : > { %2386 = vmatpush1.bf16.msra.mxu1 %v3797_v18  ;;  %2417 = vmatprep.mubr.bf16.mxu1 %v4747_v41  ;;  %v6290_v18 = vld [vmem:[#allocation64_spill] sm:$0xff]  ;;  %v6302_v41 = vld [vmem:[#allocation70_spill] sm:$0xff] }
 0x70c   : > { %2387 = vmatprep.subr.bf16.mxu1 %v3800_v61  ;;  %v6291_v61 = vld [vmem:[#allocation63_spill] sm:$0xff] }
 0x70d   : > { %2164 = vrot.lane.b32.xlu1 %v2154_v59, %s4746_s20 }
 0x70f   : > { %2388 = vmatpush1.bf16.msra.mxu1 %v3799_v51  ;;  %v3821_v51 = vcombine.low %v6291_v61, %v6290_v18  ;;  %v6303_v18 = vld [vmem:[#allocation69_spill] sm:$0xff] }
 0x710   : > { %2389 = vmatprep.subr.bf16.mxu1 %v3802_v10  ;;  %v6292_v10 = vld [vmem:[#allocation48_spill] sm:$0xff]  ;;  %v3824_v61 = vcombine.low %v6303_v18, %v6302_v41 }
 0x711   : > { %3918 = vmatprep.subr.bf16.mxu0 %v3821_v51 }
 0x77b   : > { %v2161_v50 = vpop.permute.xlu1 %2160  ;;  %v2157_v42 = vpop.permute.xlu0 %2156 }
 0x77c   : > { %v2167_v44 = vsel %vm1596_vm1, %v2151_v55, %v2157_v42 }
 0x77d   : > { %v2169_v11 = vsel %vm2168_vm5, %v2167_v44, %v2161_v50  ;;  %v3801_v44 = vcombine.low %v5451_v23, %v5454_v24 }
 0x77f   : > { %v2165_v17 = vpop.permute.xlu1 %2164  ;;  %2390 = vmatpush1.bf16.msra.mxu1 %v3801_v44  ;;  %v6295_v44 = vld [vmem:[#allocation65_spill] sm:$0xff] }
 0x780   : > { %v2171_v36 = vsel %vm2170_vm6, %v2169_v11, %v2165_v17  ;;  %v3804_v17 = vcombine.high %v5457_v25, %v5460_v26  ;;  %v3803_v11 = vcombine.low %v5457_v25, %v5460_v26 }
 0x781   : > { %v2172_v46 = vpack.c.bf16 %v2171_v36, %v2171_v36  ;;  %v3806_v36 = vcombine.high %v5463_v27, %v5466_v28 }
 0x782   : > { %2391 = vmatprep.subr.bf16.mxu1 %v3804_v17 }
 0x783   : > { %4072 = vmatmul.mubr.bf16.vlgmr.msra.gmra.mrb[8].mxu0 %v2172_v46  ;;  %2392 = vmatpush1.bf16.msra.mxu1 %v3803_v11  ;;  %v3805_v46 = vcombine.low %v5463_v27, %v5466_v28  ;;  %v6296_v11 = vld [vmem:[#allocation50_spill] sm:$0xff] }
 0x784   : > { %2393 = vmatprep.subr.bf16.mxu1 %v3806_v36  ;;  %v6297_v36 = vld [vmem:[#allocation49_spill] sm:$0xff] }
 0x787   : > { %2394 = vmatpush1.bf16.msra.mxu1 %v3805_v46  ;;  %v3814_v46 = vcombine.low %v6297_v36, %v6296_v11  ;;  %v6309_v11 = vld [vmem:[#allocation55_spill] sm:$0xff] }
 0x856   : > { %v2261_v43 = vpop.f32.mrb[8].mxu0 }
 0x857   : > { %v2262_v54 = vadd.f32 %v2261_v43, %v2177_v58  ;;  %v4073_v38 = vpop.f32.mrb[9].mxu0  ;;  %v3808_v58 = vcombine.high %v5469_v29, %v5472_v30  ;;  %v3807_v43 = vcombine.low %v5469_v29, %v5472_v30 }
 0x858   : > { %v2264_v35 = vpop.f32.mrb[10].mxu0  ;;  %v3809_v38 = vcombine.low %v5475_v31, %v5478_v32 }
 0x859   : > { %v5783_v40 = vadd.f32 %v2262_v54, %v5308_v1  ;;  %v4074_v37 = vpop.f32.mrb[11].mxu0  ;;  %2395 = vmatprep.subr.bf16.mxu1 %v3808_v58  ;;  %v3810_v54 = vcombine.high %v5475_v31, %v5478_v32  ;;  %v3812_v35 = vcombine.high %v5481_v33, %v5484_v34  ;;  %v6298_v58 = vld [vmem:[#allocation68_spill] sm:$0xff] }
 0x85a   : > { %2396 = vmatpush1.bf16.msra.mxu1 %v3807_v43  ;;  %v3811_v37 = vcombine.low %v5481_v33, %v5484_v34  ;;  %v6299_v43 = vld [vmem:[#allocation67_spill] sm:$0xff] }
 0x85b   : > { %2268 = vadd.xlane.f32.xlu1 %v5783_v40  ;;  %2397 = vmatprep.subr.bf16.mxu1 %v3810_v54  ;;  %v3823_v54 = vcombine.low %v6299_v43, %v6298_v58  ;;  %v6311_v58 = vld [vmem:[#allocation73_spill] sm:$0xff] }
 0x85e   : > { %2398 = vmatpush1.bf16.msra.mxu1 %v3809_v38  ;;  %v6300_v38 = vld [vmem:[#allocation52_spill] sm:$0xff] }
 0x85f   : > { %2399 = vmatprep.subr.bf16.mxu1 %v3812_v35  ;;  %v6301_v35 = vld [vmem:[#allocation51_spill] sm:$0xff] }
 0x862   : > { %2400 = vmatpush1.bf16.msra.mxu1 %v3811_v37  ;;  %v3815_v37 = vcombine.low %v6301_v35, %v6300_v38  ;;  %v6313_v38 = vld [vmem:[#allocation57_spill] sm:$0xff] }
 0x8e8   : > { %v2269_v59 = vpop.xlane.xlu1 %2268 }
 0x8e9   : > { %v2270_v55 = vmul.f32 0.0078125, %v2269_v59  ;;  %v6293_v59 = vld [vmem:[#allocation47_spill] sm:$0xff] }
 0x8eb   : > { %v2271_v50 = vsub.f32 %v5783_v40, %v2270_v55  ;;  %v3813_v55 = vcombine.low %v6293_v59, %v6292_v10  ;;  %v6304_v10 = vld [vmem:[#allocation54_spill] sm:$0xff]  ;;  %v6305_v59 = vld [vmem:[#allocation53_spill] sm:$0xff] }
 0x8ec   : > { %v3816_v51 = vcombine.low %v6305_v59, %v6304_v10 }
 0x8ed   : > { %v2272_v42 = vmul.f32 %v2271_v50, %v2271_v50  ;;  %3919 = vmatpush3.bf16.msra.mxu0 %v3813_v55  ;;  %v6306_v55 = vld [vmem:[#allocation72_spill] sm:$0xff] }
 0x8ef   : > { %2273 = vadd.xlane.f32.xlu0 %v2272_v42  ;;  %v6294_v42 = vld [vmem:[#allocation66_spill] sm:$0xff] }
 0x8f0   : > { %v3822_v17 = vcombine.low %v6295_v44, %v6294_v42  ;;  %v6307_v42 = vld [vmem:[#allocation71_spill] sm:$0xff] }
 0x8f1   : > { %v3825_v44 = vcombine.low %v6307_v42, %v6306_v55  ;;  %v6315_v55 = vld [vmem:[#allocation45_spill] sm:$0xff] }
 0x8f2   : > { %3920 = vmatprep.subr.bf16.mxu0 %v3822_v17  ;;  %v6308_v17 = vld [vmem:[#allocation56_spill] sm:$0xff]  ;;  %v2290_v42 = vrot.slane %v6315_v55, %v5345_v45 }
 0x8f3   : > { %3921 = vmatpush3.bf16.msra.mxu0 %v3814_v46  ;;  %v3817_v36 = vcombine.low %v6309_v11, %v6308_v17  ;;  %v6310_v46 = vld [vmem:[#allocation74_spill] sm:$0xff] }
 0x8f4   : > { %3922 = vmatprep.subr.bf16.mxu0 %v3823_v54  ;;  %v3826_v43 = vcombine.low %v6311_v58, %v6310_v46  ;;  %v6312_v54 = vld [vmem:[#allocation58_spill] sm:$0xff]  ;;  %v6317_v46 = vld [vmem:[#allocation75_spill] sm:$0xff] }
 0x8f5   : > { %v3818_v35 = vcombine.low %v6313_v38, %v6312_v54  ;;  %v6319_v54 = vld [vmem:[#allocation59_spill] sm:$0xff] }
 0x8f7   : > { %3923 = vmatpush3.bf16.msra.mxu0 %v3815_v37 }
 0x8f8   : > { %3924 = vmatprep.subr.bf16.mxu0 %v3824_v61  ;;  %v6314_v61 = vld [vmem:[#allocation44_spill] sm:$0xff] }
 0x8f9   : > { %v2283_v10 = vrot.slane %v6314_v61, %v5345_v45 }
 0x8fb   : > { %3925 = vmatpush3.bf16.msra.mxu0 %v3816_v51 }
 0x8fc   : > { %3926 = vmatprep.subr.bf16.mxu0 %v3825_v44 }
 0x8ff   : > { %3927 = vmatpush3.bf16.msra.mxu0 %v3817_v36  ;;  %v6316_v36 = vld [vmem:[#allocation76_spill] sm:$0xff] }
 0x900   : > { %3928 = vmatprep.subr.bf16.mxu0 %v3826_v43  ;;  %v3827_v58 = vcombine.low %v6317_v46, %v6316_v36  ;;  %v6318_v43 = vld [vmem:[#allocation60_spill] sm:$0xff] }
 0x901   : > { %v3819_v38 = vcombine.low %v6319_v54, %v6318_v43 }
 0x903   : > { %3929 = vmatpush3.bf16.msra.mxu0 %v3818_v35  ;;  %v6320_v35 = vld [vmem:[#allocation78_spill] sm:$0xff] }
 0x904   : > { %3930 = vmatprep.subr.bf16.mxu0 %v3827_v58 }
 0x907   : > { %3931 = vmatpush3.bf16.msra.mxu0 %v3819_v38 }
 0x97c   : > { %v2274_v37 = vpop.xlane.xlu0 %2273 }
 0x97d   : > { %v2275_v41 = vmul.f32 0.0078125, %v2274_v37  ;;  %v6321_v37 = vld [vmem:[#allocation77_spill] sm:$0xff] }
 0x97f   : > { %v2276_v18 = vadd.f32 1e-05, %v2275_v41  ;;  %v3828_v41 = vcombine.low %v6321_v37, %v6320_v35  ;;  %v6326_v37 = vld [vmem:[#allocation79_spill] sm:$0xff] }
 0x981   : > { %4355 = vrsqrt.f32 %v2276_v18  ;;  %v6322_v18 = vld [vmem:[#allocation62_spill] sm:$0xff]  ;;  %3932 = vmatprep.subr.bf16.mxu0 %v3828_v41  ;;  %v2434_v41 = vrot.slane %v6326_v37, %v5345_v45 }
 0x98b   : > { %v4356_v59 = vpop.eup %4355 }
 0x98c   : > { %v2278_v51 = vmul.f32 %v4356_v59, %v2271_v50  ;;  %v6323_v50 = vld [vmem:[#allocation61_spill] sm:$0xff] }
 0x98d   : > { %v3820_v61 = vcombine.low %v6323_v50, %v6322_v18 }
 0x98e   : > { %v2285_v44 = vmul.f32 %v2283_v10, %v2278_v51  ;;  %v6324_v10 = vld [vmem:[#allocation46_spill] sm:$0xff]  ;;  %v6325_v51 = vld [vmem:[#allocation41_spill] sm:$0xff] }
 0x98f   : > { %3933 = vmatpush3.bf16.msra.mxu0 %v3820_v61  ;;  %v2298_v59 = vrot.slane %v6324_v10, %v5345_v45  ;;  %v2302_v55 = vrot.slane %v6324_v10, %v6325_v51 }
 0x990   : > { %v2292_v17 = vadd.f32 %v2290_v42, %v2285_v44 }
 0x992   : > { %v2293_v11 = vpack.c.bf16 %v2292_v17, %v2292_v17 }
 0x994   : > { %2418 = vmatmul.mubr.bf16.vlgmr.msra.gmra.mrb[24].mxu1 %v2293_v11 }
 0xa67   : > { %v2419_v42 = vpop.f32.mrb[24].mxu1 }
 0xa68   : > { %v2420_v44 = vadd.f32 %v2419_v42, %v2298_v59  ;;  %v2421_v17 = vpop.f32.mrb[25].mxu1 }
 0xa69   : > { %v2422_v11 = vadd.f32 %v2421_v17, %v2302_v55  ;;  %v2423_v36 = vpop.f32.mrb[26].mxu1 }
 0xa6a   : > { %v2426_v46 = vmax.f32 %v2420_v44, 0.0  ;;  %v2424_v58 = vpop.f32.mrb[27].mxu1 }
 0xa6b   : > { %v2427_v43 = vmax.f32 %v2422_v11, 0.0 }
 0xa6c   : > { %v2428_v38 = vpack.c.bf16 %v2426_v46, %v2426_v46 }
 0xa6d   : > { %v2429_v54 = vpack.c.bf16 %v2427_v43, %v2427_v43 }
 0xa6f   : > { %2564 = vmatprep.mubr.bf16.mxu0 %v2429_v54 }
 0xa70   : > { %2565 = vmatmul.mubr.bf16.vlgmr.msra.gmra.mrb[12].mxu0 %v2428_v38 }
 0xb43   : > { %v3934_v35 = vpop.f32.mrb[12].mxu0 }
 0xb44   : > { %v3935_v18 = vpop.f32.mrb[13].mxu0 }
 0xb45   : > { %v3936_v50 = vadd.f32 %v3935_v18, %v3934_v35  ;;  %v3937_v61 = vpop.f32.mrb[14].mxu0 }
 0xb46   : > { %v3938_v10 = vpop.f32.mrb[15].mxu0 }
 0xb47   : > { %v2567_v51 = vadd.f32 %v3936_v50, %v2434_v41 }
 0xb49   : > { %v2572_v59 = vadd.f32 %v2567_v51, %v5783_v40 }
 0xb4b   : > { %2573 = vst [vmem:[#allocation2] sm:$0xff] %v2572_v59 }
 0xb4c PF: > { %s6327_s1 = sld [smem:[#allocation26_spill]] }
 0xb52   : > { %p3829_p6 = scmp.ne.s32.totalorder %s6327_s1, 1 }
 0xb53   : > { %vm2578_vm7 = vcmask (!%p3829_p6), 261120   ;;  %v4748_v55 = vmov (!%p3829_p6), 0.0   ;;  %vm4749_vm8 = vmmov (!%p3829_p6), 0   ;;  %v6328_v44 = vld [vmem:[#allocation80_spill] sm:$0xff] (!%p3829_p6)  ;;  %v6330_v17 = vld [vmem:[#allocation81_spill] sm:$0xff] (!%p3829_p6)  ;;  %vm2767_vm9 = vcmask (!%p3829_p6), 57344  }
 0xb54   : > { %2577 = sbr.rel (%p3829_p6) target bundleno = 4781 (0x12ad), region = 112  ;;  %4075 = vmatprep.subr.bf16.mxu1 (!%p3829_p6), %v4748_v55  ;;  %v2583_v42 = vsel (!%p3829_p6), %vm2578_vm7, %v5656_v56, 0  ;;  %4077 = vmatprep.mubr.msk.bf16.mxu1 (!%p3829_p6), %vm4749_vm8, %v4748_v55  ;;  %v2629_v40 = vsel (!%p3829_p6), %vm2578_vm7, %v5658_v60, 0  ;;  %v2675_v56 = vsel (!%p3829_p6), %vm2578_vm7, %v5660_v52, 0  ;;  %v6329_v60 = vld [vmem:[#allocation83_spill] sm:$0xff] (!%p3829_p6)  ;;  %v6331_v52 = vld [vmem:[#allocation82_spill] sm:$0xff] (!%p3829_p6) }
 0xb55   : > { %4076 = vmatpush3.bf16.xpose.msra.mxu1 (!%p3829_p6), %v2583_v42  ;;  %4099 = vmatprep.subr.bf16.mxu0 (!%p3829_p6), %v4748_v55  ;;  %vm2820_vm10 = vcmask (!%p3829_p6), 1043456   ;;  %vm2816_vm11 = vcmask (!%p3829_p6), 64512   ;;  %s4750_s7 = smov (!%p3829_p6), 32   ;;  %s4751_s8 = smov (!%p3829_p6), 64   ;;  %vm3063_vm12 = vcmask (!%p3829_p6), 523264   ;;  %vm3065_vm13 = vcmask (!%p3829_p6), 785408  }
 0xb56   : > { %4081 = vmatprep.subr.bf16.mxu1 (!%p3829_p6), %v4748_v55  ;;  %4101 = vmatprep.mubr.msk.bf16.mxu0 (!%p3829_p6), %vm4749_vm8, %v4748_v55  ;;  %s4752_s24 = smov (!%p3829_p6), 96   ;;  %vm3157_vm14 = vcmask (!%p3829_p6), 1040384  }
 0xb5c   : > { %4078 = vmatmul.mubr.msk.bf16.vlgmr.msra.gmra.mrb[0].mxu1 %vm2578_vm7, %v5618_v57  ;;  %v2721_v57 = vsel %vm2578_vm7, %v6329_v60, 0 }
 0xb5d   : > { %4082 = vmatpush3.bf16.xpose.msra.mxu1 %v2629_v40  ;;  %4083 = vmatprep.mubr.msk.bf16.mxu1 %vm4749_vm8, %v4748_v55 }
 0xb5e   : > { %4087 = vmatprep.subr.bf16.mxu1 %v4748_v55 }
 0xb64   : > { %4084 = vmatmul.mubr.msk.bf16.vlgmr.msra.gmra.mrb[4].mxu1 %vm2578_vm7, %v6328_v44 }
 0xb65   : > { %4088 = vmatpush3.bf16.xpose.msra.mxu1 %v2675_v56  ;;  %4089 = vmatprep.mubr.msk.bf16.mxu1 %vm4749_vm8, %v4748_v55 }
 0xb66   : > { %4093 = vmatprep.subr.bf16.mxu1 %v4748_v55 }
 0xb6c   : > { %4090 = vmatmul.mubr.msk.bf16.vlgmr.msra.gmra.mrb[8].mxu1 %vm2578_vm7, %v6330_v17 }
 0xb6d   : > { %4094 = vmatpush3.bf16.xpose.msra.mxu1 %v2721_v57  ;;  %4095 = vmatprep.mubr.msk.bf16.mxu1 %vm4749_vm8, %v4748_v55 }
 0xb6e   : > { %4105 = vmatprep.subr.bf16.mxu1 %v4748_v55 }
 0xb74   : > { %4096 = vmatmul.mubr.msk.bf16.vlgmr.msra.gmra.mrb[12].mxu1 %vm2578_vm7, %v6331_v52 }
 0xb75   : > { %4107 = vmatprep.mubr.msk.bf16.mxu1 %vm4749_vm8, %v4748_v55 }
 0xc2f   : > { %v2619_v11 = vpop.f32.mrb[0].mxu1 }
 0xc30   : > { %v2763_v36 = vmul.f32 0.17677669, %v2619_v11  ;;  %v4079_v46 = vpop.f32.mrb[1].mxu1 }
 0xc31   : > { %v2622_v58 = vpop.f32.mrb[2].mxu1 }
 0xc32   : > { %v4080_v43 = vpop.f32.mrb[3].mxu1  ;;  %v2768_v54 = vsel %vm2767_vm9, %v2763_v36, -inf }
 0xc33   : > { %2769 = vmax.xlane.f32.xlu0 %v2768_v54 }
 0xc37   : > { %v2665_v38 = vpop.f32.mrb[4].mxu1 }
 0xc38   : > { %v2764_v35 = vmul.f32 0.17677669, %v2665_v38  ;;  %v4085_v37 = vpop.f32.mrb[5].mxu1 }
 0xc39   : > { %v2668_v41 = vpop.f32.mrb[6].mxu1 }
 0xc3a   : > { %v4086_v18 = vpop.f32.mrb[7].mxu1  ;;  %v2771_v50 = vsel %vm2767_vm9, %v2764_v35, -inf }
 0xc3b   : > { %2772 = vmax.xlane.f32.xlu0 %v2771_v50 }
 0xc3f   : > { %v2711_v61 = vpop.f32.mrb[8].mxu1 }
 0xc40   : > { %v2765_v10 = vmul.f32 0.17677669, %v2711_v61  ;;  %v4091_v51 = vpop.f32.mrb[9].mxu1 }
 0xc41   : > { %v2714_v59 = vpop.f32.mrb[10].mxu1 }
 0xc42   : > { %v4092_v42 = vpop.f32.mrb[11].mxu1  ;;  %v2774_v40 = vsel %vm2767_vm9, %v2765_v10, -inf }
 0xc43   : > { %2775 = vmax.xlane.f32.xlu1 %v2774_v40 }
 0xc47   : > { %v2757_v56 = vpop.f32.mrb[12].mxu1 }
 0xc48   : > { %v2766_v44 = vmul.f32 0.17677669, %v2757_v56  ;;  %v4097_v60 = vpop.f32.mrb[13].mxu1 }
 0xc49   : > { %v2760_v57 = vpop.f32.mrb[14].mxu1 }
 0xc4a   : > { %v4098_v17 = vpop.f32.mrb[15].mxu1  ;;  %v2777_v52 = vsel %vm2767_vm9, %v2766_v44, -inf }
 0xc4b   : > { %2778 = vmax.xlane.f32.xlu1 %v2777_v52 }
 0xcc0   : > { %v2770_v11 = vpop.xlane.xlu0 %2769 }
 0xcc1   : > { %v2780_v46 = vsub.f32 %v2763_v36, %v2770_v11 }
 0xcc3   : > { %v2784_v58 = vmul.f32 1.442695, %v2780_v46 }
 0xcc5   : > { %4357 = vpow2.f32 %v2784_v58 }
 0xcc8   : > { %v2773_v43 = vpop.xlane.xlu0 %2772 }
 0xcc9   : > { %v2781_v54 = vsub.f32 %v2764_v35, %v2773_v43 }
 0xccb   : > { %v2786_v38 = vmul.f32 1.442695, %v2781_v54 }
 0xccd   : > { %4359 = vpow2.f32 %v2786_v38 }
 0xccf   : > { %v4358_v37 = vpop.eup %4357 }
 0xcd0   : > { %v2776_v41 = vpop.xlane.xlu1 %2775  ;;  %v2792_v18 = vsel %vm2767_vm9, %v4358_v37, 0.0 }
 0xcd1   : > { %v2782_v50 = vsub.f32 %v2765_v10, %v2776_v41  ;;  %2793 = vadd.xlane.f32.xlu0 %v2792_v18  ;;  %v2822_v10 = vsel %vm2820_vm10, %v5668_v49, 0  ;;  %v2914_v49 = vsel %vm2820_vm10, %v5672_v39, 0 }
 0xcd2   : > { %4100 = vmatpush3.bf16.msra.mxu0 %v2822_v10 }
 0xcd3   : > { %v2788_v61 = vmul.f32 1.442695, %v2782_v50  ;;  %4111 = vmatprep.subr.bf16.mxu0 %v4748_v55 }
 0xcd5   : > { %4361 = vpow2.f32 %v2788_v61 }
 0xcd7   : > { %v4360_v51 = vpop.eup %4359 }
 0xcd8   : > { %v2779_v59 = vpop.xlane.xlu1 %2778  ;;  %v2795_v42 = vsel %vm2767_vm9, %v4360_v51, 0.0 }
 0xcd9   : > { %v2783_v40 = vsub.f32 %v2766_v44, %v2779_v59  ;;  %2796 = vadd.xlane.f32.xlu1 %v2795_v42  ;;  %v2868_v44 = vsel %vm2820_vm10, %v5670_v53, 0  ;;  %v3839_v42 = vcombine.low %v5376_v2, %v5379_v3  ;;  %v6333_v2 = vld [vmem:[#allocation42_spill] sm:$0xff] }
 0xcda   : > { %4106 = vmatpush3.bf16.msra.mxu1 %v2868_v44 }
 0xcdb   : > { %v2790_v36 = vmul.f32 1.442695, %v2783_v40  ;;  %4117 = vmatprep.subr.bf16.mxu1 %v4748_v55  ;;  %v3840_v40 = vcombine.low %v5382_v4, %v5385_v5 }
 0xcdd   : > { %4363 = vpow2.f32 %v2790_v36  ;;  %v3841_v36 = vcombine.low %v5388_v6, %v5391_v7 }
 0xcdf   : > { %v4362_v56 = vpop.eup %4361 }
 0xce0   : > { %v2798_v35 = vsel %vm2767_vm9, %v4362_v56, 0.0 }
 0xce1   : > { %2799 = vadd.xlane.f32.xlu0 %v2798_v35 }
 0xce7   : > { %v4364_v60 = vpop.eup %4363 }
 0xce8   : > { %v2801_v57 = vsel %vm2767_vm9, %v4364_v60, 0.0 }
 0xce9   : > { %2802 = vadd.xlane.f32.xlu1 %v2801_v57 }
 0xd5e   : > { %v2794_v17 = vpop.xlane.xlu0 %2793 }
 0xd5f   : > { %4365 = vrcp.f32 %v2794_v17 }
 0xd66   : > { %v2797_v52 = vpop.xlane.xlu1 %2796 }
 0xd67   : > { %4367 = vrcp.f32 %v2797_v52 }
 0xd69   : > { %v4366_v11 = vpop.eup %4365 }
 0xd6a   : > { %v2808_v46 = vmul.f32 %v4366_v11, %v4358_v37  ;;  %v2960_v37 = vsel %vm2820_vm10, %v5674_v62, 0  ;;  %v3838_v62 = vcombine.low %v5370_v63, %v5373_v0  ;;  %v3842_v63 = vcombine.low %v5394_v8, %v5397_v9  ;;  %v6332_v0 = vld [vmem:[#allocation43_spill] sm:$0xff] }
 0xd6b   : > { %v3843_v3 = vcombine.low %v6333_v2, %v6332_v0  ;;  %v3844_v11 = vcombine.low %v5406_v12, %v5409_v13 }
 0xd6c   : > { %v2812_v58 = vpack.c.bf16 %v2808_v46, %v2808_v46 }
 0xd6e   : > { %4102 = vmatmul.mubr.msk.bf16.vlgmr.msra.gmra.mrb[0].mxu0 %vm2816_vm11, %v2812_v58  ;;  %v2800_v43 = vpop.xlane.xlu0 %2799 }
 0xd6f   : > { %4369 = vrcp.f32 %v2800_v43  ;;  %4112 = vmatpush3.bf16.msra.mxu0 %v2914_v49  ;;  %4113 = vmatprep.mubr.msk.bf16.mxu0 %vm4749_vm8, %v4748_v55 }
 0xd70   : > { %4123 = vmatprep.subr.bf16.mxu0 %v4748_v55 }
 0xd71   : > { %v4368_v53 = vpop.eup %4367 }
 0xd72   : > { %v2809_v54 = vmul.f32 %v4368_v53, %v4360_v51 }
 0xd74   : > { %v2813_v38 = vpack.c.bf16 %v2809_v54, %v2809_v54 }
 0xd76   : > { %4108 = vmatmul.mubr.msk.bf16.vlgmr.msra.gmra.mrb[16].mxu1 %vm2816_vm11, %v2813_v38  ;;  %v2803_v41 = vpop.xlane.xlu1 %2802  ;;  %v3845_v38 = vcombine.low %v5412_v14, %v5415_v15 }
 0xd77   : > { %4371 = vrcp.f32 %v2803_v41  ;;  %4118 = vmatpush3.bf16.msra.mxu1 %v2960_v37  ;;  %4119 = vmatprep.mubr.msk.bf16.mxu1 %vm4749_vm8, %v4748_v55 }
 0xd79   : > { %v4370_v39 = vpop.eup %4369 }
 0xd7a   : > { %v2810_v18 = vmul.f32 %v4370_v39, %v4362_v56 }
 0xd7c   : > { %v2814_v50 = vpack.c.bf16 %v2810_v18, %v2810_v18 }
 0xd7e   : > { %4114 = vmatmul.mubr.msk.bf16.vlgmr.msra.gmra.mrb[4].mxu0 %vm2816_vm11, %v2814_v50 }
 0xd7f   : > { %4139 = vmatprep.mubr.msk.bf16.mxu0 %vm4749_vm8, %v4748_v55  ;;  %4124 = vmatpush3.bf16.msra.mxu0 %v3838_v62 }
 0xd80   : > { %4125 = vmatprep.subr.bf16.mxu0 %v4748_v55 }
 0xd81   : > { %v4372_v61 = vpop.eup %4371 }
 0xd82   : > { %v2811_v51 = vmul.f32 %v4372_v61, %v4364_v60 }
 0xd83   : > { %4126 = vmatpush3.bf16.msra.mxu0 %v3839_v42 }
 0xd84   : > { %v2815_v59 = vpack.c.bf16 %v2811_v51, %v2811_v51  ;;  %4127 = vmatprep.subr.bf16.mxu0 %v4748_v55 }
 0xd86   : > { %4120 = vmatmul.mubr.msk.bf16.vlgmr.msra.gmra.mrb[20].mxu1 %vm2816_vm11, %v2815_v59 }
 0xd87   : > { %4128 = vmatpush3.bf16.msra.mxu0 %v3840_v40 }
 0xd88   : > { %4129 = vmatprep.subr.bf16.mxu0 %v4748_v55 }
 0xd8b   : > { %4130 = vmatpush3.bf16.msra.mxu0 %v3841_v36 }
 0xd8c   : > { %4131 = vmatprep.subr.bf16.mxu0 %v4748_v55 }
 0xd8f   : > { %4132 = vmatpush3.bf16.msra.mxu0 %v3842_v63 }
 0xd90   : > { %4133 = vmatprep.subr.bf16.mxu0 %v4748_v55 }
 0xd93   : > { %4134 = vmatpush3.bf16.msra.mxu0 %v3843_v3  ;;  %v3847_v3 = vcombine.high %v5439_v19, %v5442_v20 }
 0xd94   : > { %4135 = vmatprep.subr.bf16.mxu0 %v4748_v55 }
 0xd95   : > { %3265 = vmatprep.subr.bf16.mxu1 %v3847_v3 }
 0xd97   : > { %4136 = vmatpush3.bf16.msra.mxu0 %v3844_v11  ;;  %v6339_v11 = vld [vmem:[#allocation65_spill] sm:$0xff] }
 0xd98   : > { %4137 = vmatprep.subr.bf16.mxu0 %v4748_v55 }
 0xd9b   : > { %4138 = vmatpush3.bf16.msra.mxu0 %v3845_v38  ;;  %v6346_v38 = vld [vmem:[#allocation70_spill] sm:$0xff] }
 0xe41   : > { %v2858_v4 = vpop.f32.mrb[0].mxu0 }
 0xe42   : > { %v4103_v5 = vpop.f32.mrb[1].mxu0 }
 0xe43   : > { %v2861_v6 = vpop.f32.mrb[2].mxu0  ;;  %v3851_v5 = vcombine.high %v5451_v23, %v5454_v24 }
 0xe44   : > { %v4104_v7 = vpop.f32.mrb[3].mxu0 }
 0xe49   : > { %v2904_v56 = vpop.f32.mrb[16].mxu1 }
 0xe4a   : > { %v4109_v35 = vpop.f32.mrb[17].mxu1 }
 0xe4b   : > { %v2907_v60 = vpop.f32.mrb[18].mxu1 }
 0xe4c   : > { %v4110_v57 = vpop.f32.mrb[19].mxu1  ;;  %v3855_v60 = vcombine.high %v5463_v27, %v5466_v28 }
 0xe4d   : > { %v3854_v57 = vcombine.low %v5463_v27, %v5466_v28  ;;  %v3861_v27 = vcombine.high %v5481_v33, %v5484_v34  ;;  %v3860_v28 = vcombine.low %v5481_v33, %v5484_v34  ;;  %v6344_v34 = vld [vmem:[#allocation52_spill] sm:$0xff] }
 0xe51   : > { %v2950_v8 = vpop.f32.mrb[4].mxu0 }
 0xe52   : > { %v3002_v9 = vcombine.low %v2858_v4, %v2950_v8  ;;  %v4115_v10 = vpop.f32.mrb[5].mxu0  ;;  %v3846_v4 = vcombine.low %v5439_v19, %v5442_v20  ;;  %v3850_v20 = vcombine.low %v5451_v23, %v5454_v24  ;;  %v3857_v8 = vcombine.high %v5469_v29, %v5472_v30 }
 0xe53   : > { %v2953_v44 = vpop.f32.mrb[6].mxu0  ;;  %v4753_v23 = vmov 0   ;;  %v3856_v24 = vcombine.low %v5469_v29, %v5472_v30  ;;  %v6335_v29 = vld [vmem:[#allocation63_spill] sm:$0xff]  ;;  %v6336_v10 = vld [vmem:[#allocation48_spill] sm:$0xff] }
 0xe54   : > { %v4116_v17 = vpop.f32.mrb[7].mxu0  ;;  %v3009_v43 = vrot.slane %v3002_v9, %v5593_v48  ;;  %3266 = vmatpush1.bf16.msra.mxu1 %v3846_v4  ;;  %3297 = vmatprep.mubr.bf16.mxu1 %v4753_v23  ;;  %v6334_v9 = vld [vmem:[#allocation64_spill] sm:$0xff]  ;;  %v6337_v44 = vld [vmem:[#allocation47_spill] sm:$0xff]  ;;  %v6366_v23 = vld [vmem:[#allocation62_spill] sm:$0xff] }
 0xe55   : > { %v3870_v30 = vcombine.low %v6335_v29, %v6334_v9  ;;  %v3862_v17 = vcombine.low %v6337_v44, %v6336_v10  ;;  %v6358_v4 = vld [vmem:[#allocation44_spill] sm:$0xff] }
 0xe57   : > { %3965 = vmatprep.subr.bf16.mxu0 %v3870_v30 }
 0xe59   : > { %v2996_v52 = vpop.f32.mrb[20].mxu1 }
 0xe5a   : > { %v3010_v46 = vcombine.low %v2904_v56, %v2996_v52  ;;  %v4121_v58 = vpop.f32.mrb[21].mxu1  ;;  %v6338_v52 = vld [vmem:[#allocation66_spill] sm:$0xff] }
 0xe5b   : > { %v2999_v49 = vpop.f32.mrb[22].mxu1 }
 0xe5c   : > { %v3017_v53 = vrot.slane %v3010_v46, %v5593_v48  ;;  %v4122_v54 = vpop.f32.mrb[23].mxu1  ;;  %v3871_v46 = vcombine.low %v6339_v11, %v6338_v52  ;;  %v6342_v49 = vld [vmem:[#allocation68_spill] sm:$0xff] }
 0xe5e   : > { %v3018_v37 = vcombine.low %v3009_v43, %v3017_v53  ;;  %v6343_v43 = vld [vmem:[#allocation67_spill] sm:$0xff] }
 0xe5f   : > { %v3872_v33 = vcombine.low %v6343_v43, %v6342_v49  ;;  %v6345_v53 = vld [vmem:[#allocation51_spill] sm:$0xff] }
 0xe60   : > { %v3025_v41 = vrot.slane %v3018_v37, %v5598_v47  ;;  %v3864_v54 = vcombine.low %v6345_v53, %v6344_v34  ;;  %v6347_v37 = vld [vmem:[#allocation69_spill] sm:$0xff] }
 0xe62   : > { %v3032_v12 = vrot.slane %v3025_v41, %v5593_v48  ;;  %v3873_v41 = vcombine.low %v6347_v37, %v6346_v38 }
 0xe64   : > { %v3040_v13 = vrot.slane %v3032_v12, %v5598_v47  ;;  %v3033_v39 = vcombine.high %v3032_v12, %v4748_v55  ;;  %v6348_v12 = vld [vmem:[#allocation54_spill] sm:$0xff] }
 0xe66   : > { %v3048_v18 = vcombine.high %v3040_v13, %v4748_v55  ;;  %v3047_v50 = vrot.slane %v3033_v39, %v5598_v47 }
 0xe68   : > { %3051 = vrot.lane.b32.xlu0 %v3048_v18, %s4750_s7  ;;  %3055 = vrot.lane.b32.xlu1 %v3047_v50, %s4751_s8  ;;  %v3049_v14 = vcombine.high %v3047_v50, %v4748_v55  ;;  %v6350_v18 = vld [vmem:[#allocation72_spill] sm:$0xff]  ;;  %v6351_v50 = vld [vmem:[#allocation71_spill] sm:$0xff] }
 0xe6c   : > { %3059 = vrot.lane.b32.xlu1 %v3049_v14, %s4752_s24  ;;  %v3874_v14 = vcombine.low %v6351_v50, %v6350_v18 }
 0xeda   : > { %v3052_v15 = vpop.permute.xlu0 %3051  ;;  %v3056_v61 = vpop.permute.xlu1 %3055 }
 0xedb   : > { %v3062_v48 = vsel %vm2578_vm7, %v3040_v13, %v3052_v15  ;;  %v6349_v13 = vld [vmem:[#allocation53_spill] sm:$0xff]  ;;  %v6352_v15 = vld [vmem:[#allocation56_spill] sm:$0xff] }
 0xedc   : > { %v3064_v51 = vsel %vm3063_vm12, %v3062_v48, %v3056_v61  ;;  %v3865_v39 = vcombine.low %v6349_v13, %v6348_v12  ;;  %v6353_v61 = vld [vmem:[#allocation55_spill] sm:$0xff] }
 0xedd   : > { %v3866_v48 = vcombine.low %v6353_v61, %v6352_v15 }
 0xede   : > { %v3060_v59 = vpop.permute.xlu1 %3059 }
 0xedf   : > { %v3066_v62 = vsel %vm3065_vm13, %v3064_v51, %v3060_v59  ;;  %v6354_v51 = vld [vmem:[#allocation74_spill] sm:$0xff]  ;;  %v6355_v59 = vld [vmem:[#allocation73_spill] sm:$0xff] }
 0xee0   : > { %v3067_v42 = vpack.c.bf16 %v3066_v62, %v3066_v62  ;;  %v3875_v62 = vcombine.low %v6355_v59, %v6354_v51 }
 0xee2   : > { %4140 = vmatmul.mubr.bf16.vlgmr.msra.gmra.mrb[8].mxu0 %v3067_v42  ;;  %v6356_v42 = vld [vmem:[#allocation58_spill] sm:$0xff] }
 0xee3   : > { %3966 = vmatpush3.bf16.msra.mxu0 %v3862_v17 }
 0xee4   : > { %3967 = vmatprep.subr.bf16.mxu0 %v3871_v46 }
 0xfb5   : > { %v3150_v47 = vpop.f32.mrb[8].mxu0 }
 0xfb6   : > { %v3151_v40 = vadd.f32 %v3150_v47, %v5422_v16  ;;  %v4141_v36 = vpop.f32.mrb[9].mxu0  ;;  %v3849_v16 = vcombine.high %v5445_v21, %v5448_v22  ;;  %v6357_v47 = vld [vmem:[#allocation57_spill] sm:$0xff] }
 0xfb7   : > { %v3153_v63 = vpop.f32.mrb[10].mxu0 }
 0xfb8   : > { %v5961_v55 = vadd.f32 %v3151_v40, %v5308_v1  ;;  %v4142_v0 = vpop.f32.mrb[11].mxu0  ;;  %v3848_v1 = vcombine.low %v5445_v21, %v5448_v22  ;;  %3267 = vmatprep.subr.bf16.mxu1 %v3849_v16  ;;  %v3853_v21 = vcombine.high %v5457_v25, %v5460_v26  ;;  %v3852_v22 = vcombine.low %v5457_v25, %v5460_v26 }
 0xfb9   : > { %v3859_v25 = vcombine.high %v5475_v31, %v5478_v32  ;;  %v3858_v26 = vcombine.low %v5475_v31, %v5478_v32  ;;  %v6340_v31 = vld [vmem:[#allocation50_spill] sm:$0xff]  ;;  %v6341_v32 = vld [vmem:[#allocation49_spill] sm:$0xff]  ;;  %v3867_v40 = vcombine.low %v6357_v47, %v6356_v42 }
 0xfba   : > { %v3158_v2 = vsel %vm3157_vm14, %v5961_v55, 0.0  ;;  %3268 = vmatpush1.bf16.msra.mxu1 %v3848_v1  ;;  %v3863_v58 = vcombine.low %v6341_v32, %v6340_v31  ;;  %v6359_v1 = vld [vmem:[#allocation45_spill] sm:$0xff] }
 0xfbb   : > { %3159 = vadd.xlane.f32.xlu1 %v3158_v2  ;;  %3269 = vmatprep.subr.bf16.mxu1 %v3851_v5 }
 0xfbc   : > { %3968 = vmatpush3.bf16.msra.mxu0 %v3863_v58 }
 0xfbd   : > { %3969 = vmatprep.subr.bf16.mxu0 %v3872_v33  ;;  %v6370_v33 = vld [vmem:[#allocation79_spill] sm:$0xff] }
 0xfbe   : > { %3270 = vmatpush1.bf16.msra.mxu1 %v3850_v20  ;;  %v6362_v20 = vld [vmem:[#allocation60_spill] sm:$0xff] }
 0xfbf   : > { %3271 = vmatprep.subr.bf16.mxu1 %v3853_v21  ;;  %v6363_v21 = vld [vmem:[#allocation59_spill] sm:$0xff] }
 0xfc0   : > { %3970 = vmatpush3.bf16.msra.mxu0 %v3864_v54 }
 0xfc1   : > { %3971 = vmatprep.subr.bf16.mxu0 %v3873_v41 }
 0xfc2   : > { %3272 = vmatpush1.bf16.msra.mxu1 %v3852_v22  ;;  %v3868_v22 = vcombine.low %v6363_v21, %v6362_v20 }
 0xfc3   : > { %3273 = vmatprep.subr.bf16.mxu1 %v3855_v60  ;;  %v6364_v60 = vld [vmem:[#allocation78_spill] sm:$0xff] }
 0xfc4   : > { %3972 = vmatpush3.bf16.msra.mxu0 %v3865_v39 }
 0xfc5   : > { %3973 = vmatprep.subr.bf16.mxu0 %v3874_v14 }
 0xfc6   : > { %3274 = vmatpush1.bf16.msra.mxu1 %v3854_v57  ;;  %v6365_v57 = vld [vmem:[#allocation77_spill] sm:$0xff] }
 0xfc7   : > { %3275 = vmatprep.subr.bf16.mxu1 %v3857_v8  ;;  %v3877_v8 = vcombine.low %v6365_v57, %v6364_v60 }
 0xfc8   : > { %3974 = vmatpush3.bf16.msra.mxu0 %v3866_v48 }
 0xfc9   : > { %3975 = vmatprep.subr.bf16.mxu0 %v3875_v62 }
 0xfca   : > { %3276 = vmatpush1.bf16.msra.mxu1 %v3856_v24  ;;  %v6367_v24 = vld [vmem:[#allocation61_spill] sm:$0xff] }
 0xfcb   : > { %3277 = vmatprep.subr.bf16.mxu1 %v3859_v25  ;;  %v6368_v25 = vld [vmem:[#allocation46_spill] sm:$0xff] }
 0xfcc   : > { %3976 = vmatpush3.bf16.msra.mxu0 %v3867_v40 }
 0xfce   : > { %3278 = vmatpush1.bf16.msra.mxu1 %v3858_v26  ;;  %v3258_v26 = vrot.slane %v6368_v25, %v5345_v45 }
 0xfcf   : > { %3279 = vmatprep.subr.bf16.mxu1 %v3861_v27  ;;  %v6369_v27 = vld [vmem:[#allocation41_spill] sm:$0xff] }
 0xfd2   : > { %3280 = vmatpush1.bf16.msra.mxu1 %v3860_v28  ;;  %v3262_v28 = vrot.slane %v6368_v25, %v6369_v27 }
0x1048   : > { %v3160_v6 = vpop.xlane.xlu1 %3159 }
0x1049   : > { %v3161_v7 = vmul.f32 0.0078125, %v3160_v6 }
0x104b   : > { %v3162_v56 = vsub.f32 %v5961_v55, %v3161_v7  ;;  %v6360_v7 = vld [vmem:[#allocation76_spill] sm:$0xff] }
0x104d   : > { %v3163_v35 = vmul.f32 %v3162_v56, %v3162_v56 }
0x104f   : > { %v3164_v19 = vsel %vm3157_vm14, %v3163_v35, 0.0  ;;  %v6361_v35 = vld [vmem:[#allocation75_spill] sm:$0xff] }
0x1050   : > { %3165 = vadd.xlane.f32.xlu0 %v3164_v19  ;;  %v3876_v19 = vcombine.low %v6361_v35, %v6360_v7 }
0x1052   : > { %3977 = vmatprep.subr.bf16.mxu0 %v3876_v19 }
0x1053   : > { %3978 = vmatpush3.bf16.msra.mxu0 %v3868_v22 }
0x1054   : > { %3979 = vmatprep.subr.bf16.mxu0 %v3877_v8 }
0x10dd   : > { %v3166_v36 = vpop.xlane.xlu0 %3165 }
0x10de   : > { %v3167_v63 = vmul.f32 0.0078125, %v3166_v36 }
0x10e0   : > { %v3168_v0 = vadd.f32 1e-05, %v3167_v63 }
0x10e2   : > { %4373 = vrsqrt.f32 %v3168_v0 }
0x10ec   : > { %v4374_v2 = vpop.eup %4373 }
0x10ed   : > { %v3170_v3 = vmul.f32 %v4374_v2, %v3162_v56  ;;  %v3869_v56 = vcombine.low %v6367_v24, %v6366_v23 }
0x10ef   : > { %v3171_v16 = vmul.f32 %v3170_v3, %v6358_v4  ;;  %3980 = vmatpush3.bf16.msra.mxu0 %v3869_v56 }
0x10f1   : > { %v3172_v5 = vadd.f32 %v3171_v16, %v6359_v1 }
0x10f3   : > { %v3173_v6 = vpack.c.bf16 %v3172_v5, %v3172_v5 }
0x10f5   : > { %3298 = vmatmul.mubr.bf16.vlgmr.msra.gmra.mrb[24].mxu1 %v3173_v6 }
0x11c8   : > { %v3299_v9 = vpop.f32.mrb[24].mxu1 }
0x11c9   : > { %v3300_v29 = vadd.f32 %v3299_v9, %v3258_v26  ;;  %v3301_v30 = vpop.f32.mrb[25].mxu1 }
0x11ca   : > { %v3302_v10 = vadd.f32 %v3301_v30, %v3262_v28  ;;  %v3303_v44 = vpop.f32.mrb[26].mxu1 }
0x11cb   : > { %v3306_v17 = vmax.f32 %v3300_v29, 0.0  ;;  %v3304_v52 = vpop.f32.mrb[27].mxu1 }
0x11cc   : > { %v3307_v11 = vmax.f32 %v3302_v10, 0.0 }
0x11cd   : > { %v3308_v31 = vpack.c.bf16 %v3306_v17, %v3306_v17 }
0x11ce   : > { %v3309_v46 = vpack.c.bf16 %v3307_v11, %v3307_v11 }
0x11d0   : > { %3438 = vmatprep.mubr.bf16.mxu0 %v3309_v46 }
0x11d1   : > { %3439 = vmatmul.mubr.bf16.vlgmr.msra.gmra.mrb[12].mxu0 %v3308_v31 }
0x12a4   : > { %v3981_v32 = vpop.f32.mrb[12].mxu0 }
0x12a5   : > { %v3982_v58 = vpop.f32.mrb[13].mxu0 }
0x12a6   : > { %v3983_v49 = vadd.f32 %v3982_v58, %v3981_v32  ;;  %v3984_v45 = vpop.f32.mrb[14].mxu0 }
0x12a7   : > { %v3985_v43 = vpop.f32.mrb[15].mxu0 }
0x12a8   : > { %v3441_v34 = vadd.f32 %v3983_v49, %v6370_v33 }
0x12aa   : > { %v3446_v53 = vadd.f32 %v3441_v34, %v5961_v55 }
0x12ac   : > { %3447 = vst [vmem:[%s755_s21] sm:$0x1] %v3446_v53 }
0x12ad PF: > { %s6371_s4 = sld [smem:[#allocation27_spill]]  ;;  %s6372_s3 = sld [smem:[#allocation37_spill]] }
0x12ae   : > { %s6373_s11 = sld [smem:[#allocation97_spill]]  ;;  %s3461_s28 = sshll.u32 %s755_s21, 4  ;;  %s3462_s28 = int_to_ptr.vmem [resolvable:$true] %s3461_s28 }
0x12af   : > { %s3449_s30 = scalar_lea.sflag [#allocation5], %s5233_s15  ;;  %s4585_s29 = scalar_lea.vmem %s3462_s28, 16 }
0x12b0   : > { %p4586_p4 = scmp.ne.s32.totalorder %s3462_s28, %s4585_s29  ;;  %s4754_s16 = smov [#allocation15]  }
0x12b1   : > { %s4589_s5 = sshll.u32 %s4754_s16, 4  ;;  %s4590_s5 = int_to_ptr.vmem [resolvable:$false] %s4589_s5 }
0x12b2   : > { %s4591_s12 = scalar_lea.vmem %s4590_s5, 32  ;;  %p4592_p3 = scmp.lt.s32.totalorder %s3462_s28, %s4590_s5 }
0x12b3   : > { %s3878_s22 = sshll.u32 %s6371_s4, 4  ;;  %p6374_p8 = scmp.ne.s32.totalorder %s6372_s3, 0 }
0x12b4   : > { %s6045_s27 = scalar_lea.hbm %s6373_s11, %s3878_s22  ;;  %p4593_p1 = scmp.lt.s32.totalorder %s4591_s12, %s4585_s29 }
0x12b5   : > { %p4587_p11 = pnand %p4586_p4, %p6374_p8 }
0x12b6   : > { %p4594_p7 = por %p4593_p1, %p4592_p3 }
0x12b7   : > { %p4588_p2 = pneg %p4587_p11 }
0x12b9   : > { %p4595_p12 = pnand %p4594_p7, %p4588_p2 }
0x12bb   : > { %4598 = shalt.err (!%p4595_p12)
}
0x12bc   : > { %s4599_s15 = scalar_lea.hbm %s6045_s27, 16  ;;  %s4603_s14 = scalar_lea.hbm %s6373_s11, 32 }
0x12bd   : > { %p4600_p13 = scmp.ne.s32.totalorder %s6045_s27, %s4599_s15  ;;  %p4604_p5 = scmp.lt.u32.totalorder %s6045_s27, %s6373_s11 }
0x12be   : > { %p4605_p0 = scmp.lt.u32.totalorder %s4603_s14, %s4599_s15  ;;  %p4607_p4 = scmp.lt.u32.totalorder %s4599_s15, %s6045_s27 }
0x12bf   : > { %p4601_p10 = pnand %p4600_p13, %p6374_p8 }
0x12c0   : > { %p4606_p6 = por %p4605_p0, %p4604_p5 }
0x12c1   : > { %p4602_p9 = pneg %p4601_p10 }
0x12c2   : > { %p4608_p11 = por %p4607_p4, %p4606_p6 }
0x12c4   : > { %p4609_p2 = pnand %p4608_p11, %p4602_p9 }
0x12c6   : > { %4612 = shalt.err (!%p4609_p2)
}
0x12c7   : > { %4161 = dma.vmem_to_hbm [thread:$0]  (%p6374_p8), %s3462_s28, 16, %s6045_s27, %s3449_s30  }
0x12c8 PF: > { %s6375_s6 = sld [smem:[#allocation30_spill]]  ;;  %s6376_s26 = sld [smem:[#allocation23_spill]] }
0x12c9   : > { %s6377_s18 = sld [smem:[#allocation40_spill]] }
0x12ce   : > { %p4190_p3 = scmp.ge.s32.totalorder %s6375_s6, 2  ;;  %s3473_s10 = sand.u32 1, %s6376_s26  }
0x12cf   : > { %p6378_p1 = scmp.ne.s32.totalorder %s6377_s18, 0  ;;  %s3474_s17 = scalar_lea.sflag [#allocation5], %s3473_s10 }
0x12d1   : > { %p4186_p7 = pnand %p4190_p3, %p6378_p1 }
0x12d3   : > { %4674 = dma.done.wait (!%p4186_p7), %s3474_s17, 16  }
0x12d4   : > { %4676 = vsyncadd (!%p4186_p7), %s3474_s17, 4294967280  ;;  %s38_s18 = sadd.s32 1, %s6375_s6   ;;  %s6379_s25 = sld [smem:[#allocation21_spill]] }
0x12d5   : > { %p35_p12 = scmp.ge.s32.totalorder %s38_s18, 6   ;;  %s6380_s26 = sld [smem:[#allocation22_spill]] }
0x12d6   : > { %s6381_s27 = sld [smem:[#allocation38_spill]]  ;;  %s6382_s28 = sld [smem:[#allocation24_spill]] }
0x12d7   : > { %s6383_s29 = sld [smem:[#allocation25_spill]]  ;;  %s6384_s30 = sld [smem:[#allocation39_spill]] }
0x12d8   : > { %s6385_s14 = sld [smem:[#allocation28_spill]]  ;;  %s6386_s15 = sld [smem:[#allocation29_spill]] }
0x12d9   : > { %s6387_s16 = sld [smem:[#allocation33_spill]]  ;;  %s6388_s17 = sld [smem:[#allocation34_spill]] }
0x12da   :  { %37 = sbr.rel (!%p35_p12) target bundleno = 30 (0x1e), region = 219 }
0x12e1   :  { %3478 = vsyncpa [#allocation4], 1 }
0x12e2   :  { %3480 = vsyncpa [#allocation4 + $0x1], 1 }
0x12e3   :  { %3481 = vsyncpa [#allocation7], 1 }
0x12e4   :  { %3483 = vsyncpa [#allocation7 + $0x1], 1 }
0x12e5   :  { %3484 = vsyncpa [#allocation10], 1 }
0x12e6   :  { %3486 = vsyncpa [#allocation10 + $0x1], 1 }
0x12e7   :  { %3487 = vsyncpa [#allocation13], 1 }
0x12e8   :  { %3489 = vsyncpa [#allocation13 + $0x1], 1 }
0x12e9   :  { %3490 = vsyncpa [#allocation5], 1 }
0x12ea   :  { %3492 = vsyncpa [#allocation5 + $0x1], 1 }

</bundles_post_ra>
